<compile_context>
chip_gen: v7x
topology: tpu7x:2x2x1
jax: 0.10.0
libtpu: 0.0.40
codegen_flags: <defaults>
</compile_context>

<pallas_src>
import math
from functools import partial

import jax
import jax.numpy as jnp
from jax.experimental import pallas as pl
from jax.experimental.pallas import tpu as pltpu

_TWO_PI = 2.0 * math.pi
_GN_EPS = 1e-5


def _prelu(y, a):
    # PyTorch PReLU: y if y >= 0 else a * y (a broadcasts per channel).
    return jnp.where(y >= 0, y, a * y)


def _groupnorm1_per_sample(y, gamma_col, beta_col, tb, n, eps=_GN_EPS):
    """GroupNorm(num_groups=1) over each sample's (C, N) slab of a (C, TB*N) tile.

    One-pass statistics (sum & sum of squares, biased variance like PyTorch);
    the affine is folded into a single per-channel scale/bias so each slab is
    touched by exactly one multiply-add.
    """
    cnt = float(y.shape[0] * n)
    outs = []
    for s in range(tb):                      # static unroll, TB <= 8
        ys = y[:, s * n:(s + 1) * n]         # (C, N) slab of sample s
        s1 = jnp.sum(ys)
        s2 = jnp.sum(ys * ys)
        mu = s1 / cnt
        var = s2 / cnt - mu * mu
        inv = jax.lax.rsqrt(var + eps)
        scale = gamma_col * inv              # (C, 1)
        bias = beta_col - mu * scale         # (C, 1)
        outs.append(ys * scale + bias)
    return outs[0] if tb == 1 else jnp.concatenate(outs, axis=1)


def ffm_net_kernel(x_ref, bmat_ref, w1_ref, w2_ref, w3_ref, pp_ref, o_ref,
                   *, tb, n):
    xp = x_ref[0]                                        # (1, TB*N) pixels, f32

    # Grid-step-invariant parameter prep (hoisted out of any loop).
    bcol = jnp.float32(_TWO_PI) * bmat_ref[...]          # (M, 1) FFM column
    w1 = w1_ref[...]                                     # (2M, 2M) (Cout, Cin)
    w2 = w2_ref[...]                                     # (2M, 2M)
    w3 = w3_ref[...]                                     # (1, 2M)
    pp = pp_ref[...]                                     # (2M, 7) packed params
    a1, g1, b1 = pp[:, 0:1], pp[:, 1:2], pp[:, 2:3]      # (2M, 1) columns
    a2, g2, b2 = pp[:, 3:4], pp[:, 4:5], pp[:, 5:6]
    a3 = pp[0:1, 6:7]                                    # (1, 1) scalar slope

    # FFM: phase[m, p] = 2*pi * B[m] * x[p]; [sin; cos] stacked on the channel
    # (sublane) axis, pixels of all TB samples on the lane axis.
    phase = bcol * xp                                    # (M, TB*N)
    x0 = jnp.concatenate([jnp.sin(phase), jnp.cos(phase)], axis=0)  # (2M, TB*N)

    # ffmlayer1: Conv1x1 (no bias) -> PReLU(per-channel) -> GroupNorm(1, 2M)
    # (Dropout(0.15) is identity in eval mode.)
    y1 = jnp.dot(w1, x0, preferred_element_type=jnp.float32)
    x1 = _groupnorm1_per_sample(_prelu(y1, a1), g1, b1, tb, n)

    # ffmlayer2 on (x0 + x1)
    y2 = jnp.dot(w2, x0 + x1, preferred_element_type=jnp.float32)
    x2 = _groupnorm1_per_sample(_prelu(y2, a2), g2, b2, tb, n)

    # ffmlayer3 on (x1 + x2): Conv1x1 (2M -> 1) -> PReLU(init=0.0)
    y3 = jnp.dot(w3, x1 + x2, preferred_element_type=jnp.float32)   # (1, TB*N)
    x3 = _prelu(y3, a3)

    # Residual with the input pixels.
    o_ref[0] = (x3 + xp).astype(o_ref.dtype)


def init_params(key, mapping_size):
    """Deterministic synthetic parameters matching the PyTorch module shapes."""
    M = mapping_size
    C2 = 2 * M
    k0, k1, k2, k3 = jax.random.split(key, 4)

    # FFM: B ~ randn(input_channels=1, mapping_size) * scale(=20); stored as a
    # (M, 1) column for the channels-on-sublanes kernel layout.
    bmat_col = jax.random.normal(k0, (M, 1), jnp.float32) * 20.0

    # Conv2d 1x1 weights, native PyTorch (Cout, Cin) layout.
    bound = 1.0 / math.sqrt(C2)
    w1 = jax.random.uniform(k1, (C2, C2), jnp.float32, -bound, bound)
    w2 = jax.random.uniform(k2, (C2, C2), jnp.float32, -bound, bound)
    w3 = jax.random.uniform(k3, (1, C2), jnp.float32, -bound, bound)

    # Packed per-channel params, columns: [a1, g1, b1, a2, g2, b2, a3].
    a = jnp.full((C2, 1), 0.01, jnp.float32)   # PReLU(num_parameters=2M, init=0.01)
    g = jnp.ones((C2, 1), jnp.float32)         # GroupNorm gamma
    b = jnp.zeros((C2, 1), jnp.float32)        # GroupNorm beta
    a3 = jnp.zeros((C2, 1), jnp.float32)       # PReLU(num_parameters=1, init=0.0)
    packed = jnp.concatenate([a, g, b, a, g, b, a3], axis=1)   # (C2, 7)

    return dict(bmat_col=bmat_col, w1=w1, w2=w2, w3=w3, packed=packed)


def ffm_net_forward(x_nchw, params, samples_per_step=None):
    B, C, H, W = x_nchw.shape
    assert C == 1, "FFM_Net expects a single input channel"
    N = H * W
    M = params["bmat_col"].shape[0]
    C2 = 2 * M

    # Samples per grid step: batch up to 8 to amortize per-step pipeline
    # overhead, but keep >= 2 grid steps when B >= 2 so both v7x TensorCores
    # get parallel work.
    if samples_per_step is None:
        samples_per_step = max(1, min(8, B // 2))
        while B % samples_per_step:
            samples_per_step -= 1
    TB = samples_per_step
    assert B % TB == 0
    G = B // TB

    # NCHW (C=1) -> lane-dense (G, 1, TB*N); all of a step's pixels land on
    # the 128-lane axis.
    x = x_nchw.astype(jnp.float32).reshape(G, 1, TB * N)

    def rep_spec(shape):
        zeros = (0,) * len(shape)
        return pl.BlockSpec(shape, lambda i, _z=zeros: _z)

    # TODO(synk): for very large images (N = H*W >~ 100k) add a pixel-tile grid
    # axis with a two-pass GroupNorm so per-step intermediates stay within
    # v7x's 64 MiB VMEM; at the small/medium sizes handled here a whole step
    # fits comfortably.
    kernel = partial(ffm_net_kernel, tb=TB, n=N)
    out = pl.pallas_call(
        kernel,
        out_shape=jax.ShapeDtypeStruct((G, 1, TB * N), jnp.float32),
        grid_spec=pltpu.PrefetchScalarGridSpec(
            num_scalar_prefetch=0,
            grid=(G,),
            in_specs=[
                pl.BlockSpec((1, 1, TB * N), lambda i: (i, 0, 0)),   # x block
                rep_spec((M, 1)),        # FFM B column
                rep_spec((C2, C2)),      # conv1 weight (Cout, Cin)
                rep_spec((C2, C2)),      # conv2 weight
                rep_spec((1, C2)),       # conv3 weight
                rep_spec((C2, 7)),       # packed PReLU / GroupNorm params
            ],
            out_specs=pl.BlockSpec((1, 1, TB * N), lambda i: (i, 0, 0)),
        ),
        compiler_params=pltpu.CompilerParams(
            dimension_semantics=("parallel",),
            vmem_limit_bytes=32 * 1024 * 1024,
        ),
    )(x, params["bmat_col"], params["w1"], params["w2"], params["w3"],
      params["packed"])

    # (G, 1, TB*N) -> NCHW (B, 1, H, W)
    return out.reshape(B, 1, H, W)


if __name__ == "__main__":
    key = jax.random.PRNGKey(0)
    k_param, k_x = jax.random.split(key)

    mapping_size = 16          # -> 2M = 32 channels
    B, H, W = 4, 16, 16        # TB = 2 samples/step, N = 256 pixels/sample
    params = init_params(k_param, mapping_size)
    x = jax.random.normal(k_x, (B, 1, H, W), jnp.float32)

    y = ffm_net_forward(x, params)
    jax.block_until_ready(y)
    assert y.shape == (B, 1, H, W), y.shape
    print("KERNEL_OK")
</pallas_src>

<mosaic_0001>
module attributes {stable_mosaic.version = 11 : i64} {
  func.func @ffm_net_kernel(%arg0: i32, %arg1: memref<1x1x512xf32, #tpu.memory_space<vmem>>, %arg2: memref<16x1xf32, #tpu.memory_space<vmem>>, %arg3: memref<32x32xf32, #tpu.memory_space<vmem>>, %arg4: memref<32x32xf32, #tpu.memory_space<vmem>>, %arg5: memref<1x32xf32, #tpu.memory_space<vmem>>, %arg6: memref<32x7xf32, #tpu.memory_space<vmem>>, %arg7: memref<1x1x512xf32, #tpu.memory_space<vmem>>) attributes {dimension_semantics = [#tpu.dimension_semantics<parallel>], iteration_bounds = array<i64: 2>, scalar_prefetch = 0 : i64, scratch_operands = 0 : i64, tpu.core_type = #tpu.core_type<tc>, window_params = [{transform_indices = @transform_0, window_bounds = array<i64: 1, 1, 512>}, {pipeline_mode = #tpu.pipeline_mode<synchronous>, transform_indices = @transform_1, window_bounds = array<i64: 16, 1>}, {pipeline_mode = #tpu.pipeline_mode<synchronous>, transform_indices = @transform_2, window_bounds = array<i64: 32, 32>}, {pipeline_mode = #tpu.pipeline_mode<synchronous>, transform_indices = @transform_3, window_bounds = array<i64: 32, 32>}, {pipeline_mode = #tpu.pipeline_mode<synchronous>, transform_indices = @transform_4, window_bounds = array<i64: 1, 32>}, {pipeline_mode = #tpu.pipeline_mode<synchronous>, transform_indices = @transform_5, window_bounds = array<i64: 32, 7>}, {transform_indices = @transform_6, window_bounds = array<i64: 1, 1, 512>}]} {
    %c0 = arith.constant 0 : index
    %c0_0 = arith.constant 0 : index
    %c0_1 = arith.constant 0 : index
    %0 = vector.load %arg1[%c0, %c0_0, %c0_1] : memref<1x1x512xf32, #tpu.memory_space<vmem>>, vector<1x1x512xf32>
    %1 = vector.shape_cast %0 : vector<1x1x512xf32> to vector<1x512xf32>
    %c0_2 = arith.constant 0 : index
    %c0_3 = arith.constant 0 : index
    %2 = vector.load %arg2[%c0_2, %c0_3] : memref<16x1xf32, #tpu.memory_space<vmem>>, vector<16x1xf32>
    %cst = arith.constant 6.28318548 : f32
    %3 = vector.broadcast %cst : f32 to vector<16x1xf32>
    %4 = arith.mulf %3, %2 : vector<16x1xf32>
    %c0_4 = arith.constant 0 : index
    %c0_5 = arith.constant 0 : index
    %5 = vector.load %arg3[%c0_4, %c0_5] : memref<32x32xf32, #tpu.memory_space<vmem>>, vector<32x32xf32>
    %c0_6 = arith.constant 0 : index
    %c0_7 = arith.constant 0 : index
    %6 = vector.load %arg4[%c0_6, %c0_7] : memref<32x32xf32, #tpu.memory_space<vmem>>, vector<32x32xf32>
    %c0_8 = arith.constant 0 : index
    %c0_9 = arith.constant 0 : index
    %7 = vector.load %arg5[%c0_8, %c0_9] : memref<1x32xf32, #tpu.memory_space<vmem>>, vector<1x32xf32>
    %c0_10 = arith.constant 0 : index
    %c0_11 = arith.constant 0 : index
    %8 = vector.load %arg6[%c0_10, %c0_11] : memref<32x7xf32, #tpu.memory_space<vmem>>, vector<32x7xf32>
    %9 = vector.extract_strided_slice %8 {offsets = [0, 0], sizes = [32, 1], strides = [1, 1]} : vector<32x7xf32> to vector<32x1xf32>
    %10 = vector.extract_strided_slice %8 {offsets = [0, 1], sizes = [32, 1], strides = [1, 1]} : vector<32x7xf32> to vector<32x1xf32>
    %11 = vector.extract_strided_slice %8 {offsets = [0, 2], sizes = [32, 1], strides = [1, 1]} : vector<32x7xf32> to vector<32x1xf32>
    %12 = vector.extract_strided_slice %8 {offsets = [0, 3], sizes = [32, 1], strides = [1, 1]} : vector<32x7xf32> to vector<32x1xf32>
    %13 = vector.extract_strided_slice %8 {offsets = [0, 4], sizes = [32, 1], strides = [1, 1]} : vector<32x7xf32> to vector<32x1xf32>
    %14 = vector.extract_strided_slice %8 {offsets = [0, 5], sizes = [32, 1], strides = [1, 1]} : vector<32x7xf32> to vector<32x1xf32>
    %15 = vector.extract_strided_slice %8 {offsets = [0, 6], sizes = [1, 1], strides = [1, 1]} : vector<32x7xf32> to vector<1x1xf32>
    %16 = vector.broadcast %4 : vector<16x1xf32> to vector<16x512xf32>
    %17 = vector.broadcast %1 : vector<1x512xf32> to vector<16x512xf32>
    %18 = arith.mulf %16, %17 : vector<16x512xf32>
    %19 = math.sin %18 : vector<16x512xf32>
    %20 = math.cos %18 : vector<16x512xf32>
    %21 = tpu.concatenate %19, %20 in 0 : vector<16x512xf32>, vector<16x512xf32> -> vector<32x512xf32>
    %cst_12 = arith.constant dense<0.000000e+00> : vector<32x512xf32>
    %22 = tpu.matmul %5, %21, %cst_12 {dimension_numbers = #tpu.dot_dimension_numbers<[1], [0], [0], [1], [0, 0, 1, 1], [], []>} : vector<32x32xf32>, vector<32x512xf32>, vector<32x512xf32> -> vector<32x512xf32>
    %cst_13 = arith.constant 0.000000e+00 : f32
    %23 = vector.broadcast %cst_13 : f32 to vector<32x512xf32>
    %24 = arith.cmpf oge, %22, %23 : vector<32x512xf32>
    %25 = vector.broadcast %9 : vector<32x1xf32> to vector<32x512xf32>
    %26 = arith.mulf %25, %22 : vector<32x512xf32>
    %27 = arith.select %24, %22, %26 : vector<32x512xi1>, vector<32x512xf32>
    %28 = vector.extract_strided_slice %27 {offsets = [0, 0], sizes = [32, 256], strides = [1, 1]} : vector<32x512xf32> to vector<32x256xf32>
    %29 = vector.shape_cast %28 : vector<32x256xf32> to vector<1x32x256xf32>
    %cst_14 = arith.constant dense<0.000000e+00> : vector<1xf32>
    %30 = vector.multi_reduction <add>, %29, %cst_14 [1, 2] : vector<1x32x256xf32> to vector<1xf32>
    %31 = vector.shape_cast %30 : vector<1xf32> to vector<1x1x1xf32>
    %32 = vector.extract %31[0, 0, 0] : f32 from vector<1x1x1xf32>
    %33 = arith.mulf %28, %28 : vector<32x256xf32>
    %34 = vector.shape_cast %33 : vector<32x256xf32> to vector<1x32x256xf32>
    %cst_15 = arith.constant dense<0.000000e+00> : vector<1xf32>
    %35 = vector.multi_reduction <add>, %34, %cst_15 [1, 2] : vector<1x32x256xf32> to vector<1xf32>
    %36 = vector.shape_cast %35 : vector<1xf32> to vector<1x1x1xf32>
    %37 = vector.extract %36[0, 0, 0] : f32 from vector<1x1x1xf32>
    %cst_16 = arith.constant 8.192000e+03 : f32
    %38 = arith.divf %32, %cst_16 : f32
    %cst_17 = arith.constant 8.192000e+03 : f32
    %39 = arith.divf %37, %cst_17 : f32
    %40 = arith.mulf %38, %38 : f32
    %41 = arith.subf %39, %40 : f32
    %cst_18 = arith.constant 9.99999974E-6 : f32
    %42 = arith.addf %41, %cst_18 : f32
    %43 = math.rsqrt %42 : f32
    %44 = vector.broadcast %43 : f32 to vector<32x1xf32>
    %45 = arith.mulf %10, %44 : vector<32x1xf32>
    %46 = vector.broadcast %38 : f32 to vector<32x1xf32>
    %47 = arith.mulf %46, %45 : vector<32x1xf32>
    %48 = arith.subf %11, %47 : vector<32x1xf32>
    %49 = vector.broadcast %45 : vector<32x1xf32> to vector<32x256xf32>
    %50 = arith.mulf %28, %49 : vector<32x256xf32>
    %51 = vector.broadcast %48 : vector<32x1xf32> to vector<32x256xf32>
    %52 = arith.addf %50, %51 : vector<32x256xf32>
    %53 = vector.extract_strided_slice %27 {offsets = [0, 256], sizes = [32, 256], strides = [1, 1]} : vector<32x512xf32> to vector<32x256xf32>
    %54 = vector.shape_cast %53 : vector<32x256xf32> to vector<1x32x256xf32>
    %cst_19 = arith.constant dense<0.000000e+00> : vector<1xf32>
    %55 = vector.multi_reduction <add>, %54, %cst_19 [1, 2] : vector<1x32x256xf32> to vector<1xf32>
    %56 = vector.shape_cast %55 : vector<1xf32> to vector<1x1x1xf32>
    %57 = vector.extract %56[0, 0, 0] : f32 from vector<1x1x1xf32>
    %58 = arith.mulf %53, %53 : vector<32x256xf32>
    %59 = vector.shape_cast %58 : vector<32x256xf32> to vector<1x32x256xf32>
    %cst_20 = arith.constant dense<0.000000e+00> : vector<1xf32>
    %60 = vector.multi_reduction <add>, %59, %cst_20 [1, 2] : vector<1x32x256xf32> to vector<1xf32>
    %61 = vector.shape_cast %60 : vector<1xf32> to vector<1x1x1xf32>
    %62 = vector.extract %61[0, 0, 0] : f32 from vector<1x1x1xf32>
    %cst_21 = arith.constant 8.192000e+03 : f32
    %63 = arith.divf %57, %cst_21 : f32
    %cst_22 = arith.constant 8.192000e+03 : f32
    %64 = arith.divf %62, %cst_22 : f32
    %65 = arith.mulf %63, %63 : f32
    %66 = arith.subf %64, %65 : f32
    %cst_23 = arith.constant 9.99999974E-6 : f32
    %67 = arith.addf %66, %cst_23 : f32
    %68 = math.rsqrt %67 : f32
    %69 = vector.broadcast %68 : f32 to vector<32x1xf32>
    %70 = arith.mulf %10, %69 : vector<32x1xf32>
    %71 = vector.broadcast %63 : f32 to vector<32x1xf32>
    %72 = arith.mulf %71, %70 : vector<32x1xf32>
    %73 = arith.subf %11, %72 : vector<32x1xf32>
    %74 = vector.broadcast %70 : vector<32x1xf32> to vector<32x256xf32>
    %75 = arith.mulf %53, %74 : vector<32x256xf32>
    %76 = vector.broadcast %73 : vector<32x1xf32> to vector<32x256xf32>
    %77 = arith.addf %75, %76 : vector<32x256xf32>
    %78 = tpu.concatenate %52, %77 in 1 : vector<32x256xf32>, vector<32x256xf32> -> vector<32x512xf32>
    %79 = arith.addf %21, %78 : vector<32x512xf32>
    %cst_24 = arith.constant dense<0.000000e+00> : vector<32x512xf32>
    %80 = tpu.matmul %6, %79, %cst_24 {dimension_numbers = #tpu.dot_dimension_numbers<[1], [0], [0], [1], [0, 0, 1, 1], [], []>} : vector<32x32xf32>, vector<32x512xf32>, vector<32x512xf32> -> vector<32x512xf32>
    %cst_25 = arith.constant 0.000000e+00 : f32
    %81 = vector.broadcast %cst_25 : f32 to vector<32x512xf32>
    %82 = arith.cmpf oge, %80, %81 : vector<32x512xf32>
    %83 = vector.broadcast %12 : vector<32x1xf32> to vector<32x512xf32>
    %84 = arith.mulf %83, %80 : vector<32x512xf32>
    %85 = arith.select %82, %80, %84 : vector<32x512xi1>, vector<32x512xf32>
    %86 = vector.extract_strided_slice %85 {offsets = [0, 0], sizes = [32, 256], strides = [1, 1]} : vector<32x512xf32> to vector<32x256xf32>
    %87 = vector.shape_cast %86 : vector<32x256xf32> to vector<1x32x256xf32>
    %cst_26 = arith.constant dense<0.000000e+00> : vector<1xf32>
    %88 = vector.multi_reduction <add>, %87, %cst_26 [1, 2] : vector<1x32x256xf32> to vector<1xf32>
    %89 = vector.shape_cast %88 : vector<1xf32> to vector<1x1x1xf32>
    %90 = vector.extract %89[0, 0, 0] : f32 from vector<1x1x1xf32>
    %91 = arith.mulf %86, %86 : vector<32x256xf32>
    %92 = vector.shape_cast %91 : vector<32x256xf32> to vector<1x32x256xf32>
    %cst_27 = arith.constant dense<0.000000e+00> : vector<1xf32>
    %93 = vector.multi_reduction <add>, %92, %cst_27 [1, 2] : vector<1x32x256xf32> to vector<1xf32>
    %94 = vector.shape_cast %93 : vector<1xf32> to vector<1x1x1xf32>
    %95 = vector.extract %94[0, 0, 0] : f32 from vector<1x1x1xf32>
    %cst_28 = arith.constant 8.192000e+03 : f32
    %96 = arith.divf %90, %cst_28 : f32
    %cst_29 = arith.constant 8.192000e+03 : f32
    %97 = arith.divf %95, %cst_29 : f32
    %98 = arith.mulf %96, %96 : f32
    %99 = arith.subf %97, %98 : f32
    %cst_30 = arith.constant 9.99999974E-6 : f32
    %100 = arith.addf %99, %cst_30 : f32
    %101 = math.rsqrt %100 : f32
    %102 = vector.broadcast %101 : f32 to vector<32x1xf32>
    %103 = arith.mulf %13, %102 : vector<32x1xf32>
    %104 = vector.broadcast %96 : f32 to vector<32x1xf32>
    %105 = arith.mulf %104, %103 : vector<32x1xf32>
    %106 = arith.subf %14, %105 : vector<32x1xf32>
    %107 = vector.broadcast %103 : vector<32x1xf32> to vector<32x256xf32>
    %108 = arith.mulf %86, %107 : vector<32x256xf32>
    %109 = vector.broadcast %106 : vector<32x1xf32> to vector<32x256xf32>
    %110 = arith.addf %108, %109 : vector<32x256xf32>
    %111 = vector.extract_strided_slice %85 {offsets = [0, 256], sizes = [32, 256], strides = [1, 1]} : vector<32x512xf32> to vector<32x256xf32>
    %112 = vector.shape_cast %111 : vector<32x256xf32> to vector<1x32x256xf32>
    %cst_31 = arith.constant dense<0.000000e+00> : vector<1xf32>
    %113 = vector.multi_reduction <add>, %112, %cst_31 [1, 2] : vector<1x32x256xf32> to vector<1xf32>
    %114 = vector.shape_cast %113 : vector<1xf32> to vector<1x1x1xf32>
    %115 = vector.extract %114[0, 0, 0] : f32 from vector<1x1x1xf32>
    %116 = arith.mulf %111, %111 : vector<32x256xf32>
    %117 = vector.shape_cast %116 : vector<32x256xf32> to vector<1x32x256xf32>
    %cst_32 = arith.constant dense<0.000000e+00> : vector<1xf32>
    %118 = vector.multi_reduction <add>, %117, %cst_32 [1, 2] : vector<1x32x256xf32> to vector<1xf32>
    %119 = vector.shape_cast %118 : vector<1xf32> to vector<1x1x1xf32>
    %120 = vector.extract %119[0, 0, 0] : f32 from vector<1x1x1xf32>
    %cst_33 = arith.constant 8.192000e+03 : f32
    %121 = arith.divf %115, %cst_33 : f32
    %cst_34 = arith.constant 8.192000e+03 : f32
    %122 = arith.divf %120, %cst_34 : f32
    %123 = arith.mulf %121, %121 : f32
    %124 = arith.subf %122, %123 : f32
    %cst_35 = arith.constant 9.99999974E-6 : f32
    %125 = arith.addf %124, %cst_35 : f32
    %126 = math.rsqrt %125 : f32
    %127 = vector.broadcast %126 : f32 to vector<32x1xf32>
    %128 = arith.mulf %13, %127 : vector<32x1xf32>
    %129 = vector.broadcast %121 : f32 to vector<32x1xf32>
    %130 = arith.mulf %129, %128 : vector<32x1xf32>
    %131 = arith.subf %14, %130 : vector<32x1xf32>
    %132 = vector.broadcast %128 : vector<32x1xf32> to vector<32x256xf32>
    %133 = arith.mulf %111, %132 : vector<32x256xf32>
    %134 = vector.broadcast %131 : vector<32x1xf32> to vector<32x256xf32>
    %135 = arith.addf %133, %134 : vector<32x256xf32>
    %136 = tpu.concatenate %110, %135 in 1 : vector<32x256xf32>, vector<32x256xf32> -> vector<32x512xf32>
    %137 = arith.addf %78, %136 : vector<32x512xf32>
    %cst_36 = arith.constant dense<0.000000e+00> : vector<1x512xf32>
    %138 = tpu.matmul %7, %137, %cst_36 {dimension_numbers = #tpu.dot_dimension_numbers<[1], [0], [0], [1], [0, 0, 1, 1], [], []>} : vector<1x32xf32>, vector<32x512xf32>, vector<1x512xf32> -> vector<1x512xf32>
    %cst_37 = arith.constant 0.000000e+00 : f32
    %139 = vector.broadcast %cst_37 : f32 to vector<1x512xf32>
    %140 = arith.cmpf oge, %138, %139 : vector<1x512xf32>
    %141 = vector.broadcast %15 : vector<1x1xf32> to vector<1x512xf32>
    %142 = arith.mulf %141, %138 : vector<1x512xf32>
    %143 = arith.select %140, %138, %142 : vector<1x512xi1>, vector<1x512xf32>
    %144 = arith.addf %143, %1 : vector<1x512xf32>
    %c0_38 = arith.constant 0 : index
    %c0_39 = arith.constant 0 : index
    %c0_40 = arith.constant 0 : index
    %145 = vector.load %arg7[%c0_38, %c0_39, %c0_40] : memref<1x1x512xf32, #tpu.memory_space<vmem>>, vector<1x1x512xf32>
    %146 = vector.shape_cast %145 : vector<1x1x512xf32> to vector<1x512xf32>
    %147 = vector.shape_cast %144 : vector<1x512xf32> to vector<1x1x512xf32>
    tpu.vector_store %arg7[%c0_38, %c0_39, %c0_40], %147 {strides = array<i32>} : memref<1x1x512xf32, #tpu.memory_space<vmem>>, vector<1x1x512xf32>,
    return
  }
  func.func @transform_0(%arg0: i32) -> (i32, i32, i32) {
    %c0_i32 = arith.constant 0 : i32
    %c0_i32_0 = arith.constant 0 : i32
    %c0_i32_1 = arith.constant 0 : i32
    return %arg0, %c0_i32, %c0_i32_0 : i32, i32, i32
  }
  func.func @transform_1(%arg0: i32) -> (i32, i32) {
    %c0_i32 = arith.constant 0 : i32
    %c0_i32_0 = arith.constant 0 : i32
    %c0_i32_1 = arith.constant 0 : i32
    return %c0_i32, %c0_i32_0 : i32, i32
  }
  func.func @transform_2(%arg0: i32) -> (i32, i32) {
    %c0_i32 = arith.constant 0 : i32
    %c0_i32_0 = arith.constant 0 : i32
    %c0_i32_1 = arith.constant 0 : i32
    return %c0_i32, %c0_i32_0 : i32, i32
  }
  func.func @transform_3(%arg0: i32) -> (i32, i32) {
    %c0_i32 = arith.constant 0 : i32
    %c0_i32_0 = arith.constant 0 : i32
    %c0_i32_1 = arith.constant 0 : i32
    return %c0_i32, %c0_i32_0 : i32, i32
  }
  func.func @transform_4(%arg0: i32) -> (i32, i32) {
    %c0_i32 = arith.constant 0 : i32
    %c0_i32_0 = arith.constant 0 : i32
    %c0_i32_1 = arith.constant 0 : i32
    return %c0_i32, %c0_i32_0 : i32, i32
  }
  func.func @transform_5(%arg0: i32) -> (i32, i32) {
    %c0_i32 = arith.constant 0 : i32
    %c0_i32_0 = arith.constant 0 : i32
    %c0_i32_1 = arith.constant 0 : i32
    return %c0_i32, %c0_i32_0 : i32, i32
  }
  func.func @transform_6(%arg0: i32) -> (i32, i32, i32) {
    %c0_i32 = arith.constant 0 : i32
    %c0_i32_0 = arith.constant 0 : i32
    %c0_i32_1 = arith.constant 0 : i32
    return %arg0, %c0_i32, %c0_i32_0 : i32, i32, i32
  }
}

</mosaic_0001>

<bundles_post_ra>
// kernel: tpu_custom_call.1
= control target key start
LH: loop header
LB: loop body
LE: loop exit
PB: predicated region body
PF: predicated region fallthrough
CT: control target
= control target key end

     0   :  { %11 = vsyncpa [#allocation3], 0  ;;  %s5579_s0 = inlined_call_operand.hbm [shape: f32[2,1,512], index: 0, kind: input, shape index: {}]   ;;  %s5580_s1 = inlined_call_operand.vmem [shape: f32[16,1], index: 1, kind: input, shape index: {}]   ;;  %s5581_s2 = inlined_call_operand.vmem [shape: f32[32,32], index: 2, kind: input, shape index: {}]   ;;  %s5582_s3 = inlined_call_operand.vmem [shape: f32[32,32], index: 3, kind: input, shape index: {}]   ;;  %s5583_s4 = inlined_call_operand.hbm [shape: f32[1,32], index: 4, kind: input, shape index: {}]   ;;  %s5584_s5 = inlined_call_operand.vmem [shape: f32[32,7], index: 5, kind: input, shape index: {}]   ;;  %s5585_s6 = inlined_call_operand.hbm [shape: f32[2,1,512], index: 6, kind: output, shape index: {}]  }
   0x1   :  { %13 = vsyncpa [#allocation3 + $0x1], 0 }
   0x2   :  { %14 = vsyncpa [#allocation6], 0 }
   0x3   :  { %15 = vsyncpa [#allocation4], 0 }
   0x4   :  { %17 = vsyncpa [#allocation4 + $0x1], 0  ;;  %s3908_s21 = smov 0   ;;  %s3910_s22 = smov 0  }
   0x5   :  { %s3912_s23 = smov 0   ;;  %s3914_s24 = smov 0  }
   0x6 LB: > { %s3929_s25 = sadd.s32 4294967295, %s3852_s24   ;;  %s3385_s26 = sadd.s32 4294967294, %s3852_s24   ;;  %s3852_s24 = sphi %s3914_s24, %s5621_s24   ;;  %s3848_s23 = sphi %s3912_s23, %s5620_s23   ;;  %s3844_s22 = sphi %s3910_s22, %s5619_s22   ;;  %s3840_s21 = sphi %s3908_s21, %s5618_s21  }
   0x7   : > { %p43_p0 = scmp.ne.s32.totalorder %s3844_s22, %s3840_s21  ;;  %p5586_p1 = scmp.eq.s32.totalorder %s3929_s25, 0 }
   0x8   : > { %p178_p3 = scmp.eq.s32.totalorder %s3385_s26, 1  ;;  %p3386_p5 = scmp.ge.s32.totalorder %s3852_s24, 1 }
   0x9   : > { %p3938_p4 = por %p5586_p1, %p43_p0  ;;  %p185_p7 = scmp.lt.s32.totalorder %s3852_s24, 3 }
   0xa   : > { %p3943_p6 = por %p178_p3, %p43_p0  ;;  %s3854_s30 = smov [#allocation5]  }
   0xb   : > { %s5589_s27 = scalar_select %p3938_p4, 1, 0 }
   0xc   : > { %s5590_s28 = scalar_select %p3943_p6, 1, 0 }
   0xd   : > { %p3948_p8 = pnand %p3386_p5, %p185_p7  ;;  %s207_s7 = sshll.u32 %s3854_s30, 4  ;;  %s208_s7 = int_to_ptr.vmem [resolvable:$true] %s207_s7 }
   0xe   : > { %s3956_s8 = sadd.s32 1, %s3852_s24   ;;  %s30_s12 = sadd.s32 1, %s3848_s23 }
   0xf   : > { %s5591_s29 = scalar_select %p3948_p8, 1, 0 }
  0x10   : > { %p3597_p10 = pneg %p3948_p8  ;;  %s27_s10 = ssub.s32 %s3852_s24, %s3956_s8 }
  0x11   : > { %p3966_p12 = scmp.eq.s32.totalorder %s27_s10, 0  ;;  %s3724_s15 = scalar_lea.hbm %s5583_s4, 16 }
  0x12   : > { %p3960_p11 = pnand %p3597_p10, %p5586_p1  ;;  %p3725_p0 = scmp.ne.s32.totalorder %s5583_s4, %s3724_s15 }
  0x13   : > { %s5593_s11 = scalar_select %p3966_p12, 1, 0 }
  0x14   : > { %p3726_p3 = pneg %p3960_p11  ;;  %p3731_p10 = scmp.lt.u32.totalorder %s3724_s15, %s5583_s4 }
  0x16   : > { %p3727_p5 = pnand %p3726_p3, %p3725_p0 }
  0x18   : > { %p3728_p7 = pneg %p3727_p5 }
  0x1a   : > { %p3733_p9 = pnand %p3731_p10, %p3728_p7 }
  0x1c   : > { %3736 = shalt.err (!%p3733_p9)
}
  0x1d   : > { %s3737_s20 = scalar_lea.vmem %s208_s7, 16  ;;  %s3744_s26 = scalar_lea.vmem %s208_s7, 32 }
  0x1e   : > { %p3738_p1 = scmp.ne.s32.totalorder %s208_s7, %s3737_s20  ;;  %p3745_p6 = scmp.lt.s32.totalorder %s208_s7, %s208_s7 }
  0x1f   : > { %p3746_p4 = scmp.lt.s32.totalorder %s3744_s26, %s3737_s20 }
  0x20   : > { %p3740_p2 = pnand %p3738_p1, %p3726_p3 }
  0x21   : > { %p3747_p8 = por %p3746_p4, %p3745_p6 }
  0x22   : > { %p3741_p13 = pneg %p3740_p2 }
  0x24   : > { %p3748_p12 = pnand %p3747_p8, %p3741_p13 }
  0x26   : > { %3751 = shalt.err (!%p3748_p12)
}
  0x27   : > { %3600 = dma.hbm_to_vmem [thread:$0]  (!%p3960_p11), %s5583_s4, 16, %s208_s7, [#allocation6]  }
  0x28   : > { %p5594_p1 = scmp.ne.s32.totalorder %s5593_s11, 0  ;;  %p38_p2 = scmp.eq.s32.totalorder %s3852_s24, 0 }
  0x29   : > { %p5595_p4 = scmp.ne.s32.totalorder %s3848_s23, %s3844_s22  ;;  %p5596_p6 = scmp.eq.s32.totalorder %s3929_s25, 1 }
  0x2a   : > { %s3992_s13 = scalar_select %p5594_p1, %s3848_s23, %s30_s12  }
  0x2b   : > { %p4000_p8 = por %p5596_p6, %p5595_p4  ;;  %p3610_p9 = scmp.lt.s32.totalorder %s3852_s24, 2 }
  0x2c   : > { %s221_s14 = sand.u32 1, %s3848_s23   ;;  %p5598_p12 = pmov %p5595_p4 }
  0x2d   : > { %s3389_s15 = sshll.u32 %s221_s14, 2  ;;  %s3483_s16 = sshll.u32 %s3852_s24, 6 }
  0x2e   : > { %p39_p13 = por %p38_p2, %p5598_p12  ;;  %s4013_s7 = scalar_lea.hbm %s5579_s0, %s3483_s16 }
  0x2f   : > { %s225_s11 = scalar_lea.vmem [#allocation2], %s3389_s15  ;;  %s222_s20 = scalar_lea.sflag [#allocation3], %s221_s14 }
  0x30   : > { %s233_s12 = sshll.u32 %s225_s11, 4  ;;  %p4015_p11 = pnand %p3610_p9, %p39_p13  ;;  %s4019_s12 = int_to_ptr.vmem [resolvable:$true] %s233_s12 }
  0x31   : > { %s3752_s26 = scalar_lea.hbm %s4013_s7, 64  ;;  %s3757_s15 = scalar_lea.hbm %s5579_s0, 128 }
  0x32   : > { %p3753_p0 = scmp.ne.s32.totalorder %s4013_s7, %s3752_s26  ;;  %p3754_p3 = pneg %p4015_p11 }
  0x33   : > { %p3758_p10 = scmp.lt.u32.totalorder %s4013_s7, %s5579_s0  ;;  %p3759_p1 = scmp.lt.u32.totalorder %s3757_s15, %s3752_s26 }
  0x34   : > { %p3755_p5 = pnand %p3754_p3, %p3753_p0  ;;  %p3761_p4 = scmp.lt.u32.totalorder %s3752_s26, %s4013_s7 }
  0x35   : > { %p3760_p2 = por %p3759_p1, %p3758_p10 }
  0x36   : > { %p3756_p7 = pneg %p3755_p5 }
  0x37   : > { %p3762_p6 = por %p3761_p4, %p3760_p2 }
  0x39   : > { %p3763_p9 = pnand %p3762_p6, %p3756_p7 }
  0x3b   : > { %3766 = shalt.err (!%p3763_p9)
}
  0x3c   : > { %s3767_s14 = scalar_lea.vmem %s4019_s12, 64  ;;  %s3855_s18 = smov [#allocation2]  }
  0x3d   : > { %p3768_p12 = scmp.ne.s32.totalorder %s4019_s12, %s3767_s14  ;;  %s3772_s11 = sshll.u32 %s3855_s18, 4  ;;  %s3773_s11 = int_to_ptr.vmem [resolvable:$false] %s3772_s11 }
  0x3e   : > { %s3774_s30 = scalar_lea.vmem %s3773_s11, 128  ;;  %p3775_p5 = scmp.lt.s32.totalorder %s4019_s12, %s3773_s11 }
  0x3f   : > { %p3770_p13 = pnand %p3768_p12, %p3754_p3  ;;  %p3776_p10 = scmp.lt.s32.totalorder %s3774_s30, %s3767_s14 }
  0x41   : > { %p3771_p0 = pneg %p3770_p13  ;;  %p3777_p1 = por %p3776_p10, %p3775_p5 }
  0x43   : > { %p3778_p2 = pnand %p3777_p1, %p3771_p0 }
  0x45   : > { %3781 = shalt.err (!%p3778_p2)
}
  0x46   : > { %3604 = dma.hbm_to_vmem [thread:$0]  (!%p4015_p11), %s4013_s7, 64, %s4019_s12, %s222_s20  }
  0x47   : > { %p5600_p7 = scmp.ne.s32.totalorder %s5591_s29, 0 }
  0x48   : > { %s4049_s26 = sand.u32 (!%p5600_p7), 1, %s3844_s22   ;;  %p5601_p3 = scmp.ne.s32.totalorder (!%p5600_p7), %s5589_s27, 0 }
  0x49   : > { %242 = sbr.rel (%p5600_p7) target bundleno = 2342 (0x926), region = 44  ;;  %s3393_s10 = sshll.u32 (!%p5600_p7), %s4049_s26, 2 }
  0x4a   : > { %s245_s15 = scalar_lea.sflag (!%p5600_p7), [#allocation3], %s4049_s26  ;;  %s248_s16 = scalar_lea.vmem (!%p5600_p7), [#allocation2], %s3393_s10 }
  0x50   : > { %3827 = dma.done.wait (%p5601_p3), %s245_s15, 64  }
  0x51   : > { %3829 = vsyncadd (%p5601_p3), %s245_s15, 4294967232  ;;  %p5602_p11 = scmp.eq.s32.totalorder %s3929_s25, 0 }
  0x53   : > { %3831 = dma.done.wait (%p5602_p11), [#allocation6], 16   ;;  %p5603_p4 = pmov %p5602_p11 }
  0x54   : > { %v3856_v0 = vmov 0   ;;  %v282_v1 = vld [vmem:[%s5580_s1] sm:$0xff]  ;;  %v283_v2 = vld [vmem:[%s5580_s1 + $0x8] sm:$0xff]  ;;  %v297_v5 = vld [vmem:[%s5584_s5 + $0x10] sm:$0xff]  ;;  %v310_v6 = vlaneseq  ;;  %v3857_v54 = vmov 2475754826  }
  0x55   : > { %3833 = vsyncadd (%p5603_p4), [#allocation6], 4294967280  ;;  %3662 = vset.pattern.permute.xlu0 %v3856_v0  ;;  %3663 = vset.pattern.permute.xlu1 %v3856_v0  ;;  %v284_v3 = vmul.f32 6.2831855, %v282_v1  ;;  %v285_v4 = vmul.f32 6.2831855, %v283_v2 }
  0x56   : > { %v4073_v7 = vshrl.u32 %v310_v6, 7  ;;  %v281_v10 = vld [vmem:[%s248_s16] sm:$0xf]  ;;  %v3858_v61 = vmov 683565275   ;;  %s3865_s19 = smov 1  }
  0x57   : > { %301 = vperm.xlu0 %3662, %v284_v3  }
  0x58   : > { %v316_v8 = vsub.s32 1, %v4073_v7  ;;  %v324_v9 = vsub.s32 3, %v4073_v7  ;;  %v312_v11 = vsub.s32 0, %v4073_v7  ;;  %v320_v12 = vsub.s32 2, %v4073_v7 }
  0x5a   : > { %v4079_v13 = vrot.slane %v281_v10, %v316_v8  ;;  %v4081_v14 = vrot.slane %v281_v10, %v324_v9  ;;  %v4083_v15 = vrot.slane %v281_v10, %v312_v11  ;;  %v4085_v17 = vrot.slane %v281_v10, %v320_v12 }
  0x5b   : > { %306 = vperm.xlu0 %3662, %v285_v4   ;;  %v3860_v10 = vmov 2102212464  }
  0x5f   : > { %2213 = vperm.xlu0 %3662, %v297_v5   ;;  %v3859_v5 = vmov 2131351028  }
  0xd6   : > { %v302_v16 = vpop.permute.xlu0 %301 }
  0xd7   : > { %v4088_v18 = vmul.f32 %v4079_v13, %v302_v16  ;;  %v4091_v19 = vmul.f32 %v4081_v14, %v302_v16  ;;  %v4094_v20 = vmul.f32 %v4083_v15, %v302_v16  ;;  %v4099_v24 = vmul.f32 %v4085_v17, %v302_v16 }
  0xd8   : > { %v3861_v16 = vmov 920167782  }
  0xd9   : > { %v445_v21 = vand.u32 2139095040, %v4088_v18  ;;  %v653_v22 = vand.u32 2139095040, %v4091_v19  ;;  %v341_v27 = vand.u32 2139095040, %v4094_v20  ;;  %v549_v32 = vand.u32 2139095040, %v4099_v24 }
  0xda   : > { %v307_v23 = vpop.permute.xlu0 %306  ;;  %v442_v45 = vand.u32 2147483647, %v4088_v18 }
  0xdb   : > { %v446_v25 = vshrl.u32 %v445_v21, 23  ;;  %v4102_v26 = vmul.f32 %v4079_v13, %v307_v23  ;;  %v654_v29 = vshrl.u32 %v653_v22, 23  ;;  %v342_v33 = vshrl.u32 %v341_v27, 23 }
  0xdc   : > { %v550_v38 = vshrl.u32 %v549_v32, 23  ;;  %v4108_v39 = vmul.f32 %v4083_v15, %v307_v23  ;;  %v4111_v40 = vmul.f32 %v4085_v17, %v307_v23  ;;  %v4115_v47 = vmul.f32 %v4081_v14, %v307_v23 }
  0xdd   : > { %v3400_v28 = vadd.s32 4294967169, %v446_v25  ;;  %v861_v30 = vand.u32 2139095040, %v4102_v26  ;;  %v3408_v36 = vadd.s32 4294967169, %v654_v29  ;;  %v3396_v41 = vadd.s32 4294967169, %v342_v33 }
  0xde   : > { %v3404_v46 = vadd.s32 4294967169, %v550_v38  ;;  %v757_v49 = vand.u32 2139095040, %v4108_v39  ;;  %v965_v50 = vand.u32 2139095040, %v4111_v40  ;;  %v449_v53 = vand.u32 8388607, %v442_v45 }
  0xdf   : > { %v452_v31 = vadd.s32 1, %v3400_v28  ;;  %v862_v34 = vshrl.u32 %v861_v30, 23  ;;  %v660_v44 = vadd.s32 1, %v3408_v36  ;;  %v348_v51 = vadd.s32 1, %v3396_v41 }
  0xe0   : > { %v4122_v56 = vadd.s32 1, %v3404_v46  ;;  %v1069_v57 = vand.u32 2139095040, %v4115_v47  ;;  %v758_v58 = vshrl.u32 %v757_v49, 23  ;;  %v4127_v60 = vshrl.u32 %v965_v50, 23 }
  0xe1   : > { %vm453_vm0 = vcmp.gt.s32.totalorder %v452_v31, 0  ;;  %v3416_v42 = vadd.s32 4294967169, %v862_v34  ;;  %vm661_vm2 = vcmp.gt.s32.totalorder %v660_v44, 0  ;;  %vm349_vm3 = vcmp.gt.s32.totalorder %v348_v51, 0 }
  0xe2   : > { %v454_v35 = vsel %vm453_vm0, %v452_v31, 0  ;;  %v4130_v0 = vsel %vm661_vm2, %v660_v44, 0  ;;  %v450_v2 = vor.u32 8388608, %v449_v53  ;;  %v3862_v27 = vmov 1326507024  }
  0xe3   : > { %v456_v37 = vand.u32 31, %v454_v35  ;;  %v868_v48 = vadd.s32 1, %v3416_v42  ;;  %v455_v63 = vshrl.u32 %v454_v35, 5  ;;  %v4147_v49 = vsel %vm349_vm3, %v348_v51, 0 }
  0xe4   : > { %v490_v44 = vshll.u32 %v450_v2, 8  ;;  %vm557_vm8 = vcmp.gt.s32.totalorder %v4122_v56, 0  ;;  %vm4277_vm3 = vcmp.le.f32.partialorder %v442_v45, 0.7853982 }
  0xe5   : > { %v457_v43 = vsub.s32 32, %v456_v37  ;;  %vm869_vm1 = vcmp.gt.s32.totalorder %v868_v48, 0  ;;  %v459_v62 = vshll.u32 %v3858_v61, %v456_v37  ;;  %v462_v4 = vshll.u32 %v3857_v54, %v456_v37 }
  0xe6   : > { %v870_v52 = vsel %vm869_vm1, %v868_v48, 0  ;;  %v465_v9 = vshll.u32 %v3859_v5, %v456_v37  ;;  %v468_v12 = vshll.u32 %v3860_v10, %v456_v37  ;;  %v471_v25 = vshll.u32 %v3861_v16, %v456_v37 }
  0xe7   : > { %v460_v55 = vshrl.u32 %v3857_v54, %v457_v43  ;;  %v4125_v59 = vand.u32 31, %v870_v52  ;;  %v458_v1 = vshrl.u32 %v3858_v61, %v457_v43  ;;  %v463_v8 = vshrl.u32 %v3859_v5, %v457_v43 }
  0xe8   : > { %v466_v11 = vshrl.u32 %v3860_v10, %v457_v43  ;;  %v469_v21 = vshrl.u32 %v3861_v16, %v457_v43  ;;  %v472_v28 = vshrl.u32 %v3862_v27, %v457_v43  ;;  %vm474_vm4 = vcmp.lt.s32.totalorder %v455_v63, 1 }
  0xe9   : > { %v461_v3 = vor.u32 %v460_v55, %v459_v62  ;;  %v4140_v22 = vsub.s32 32, %v4125_v59  ;;  %v464_v23 = vor.u32 %v463_v8, %v462_v4  ;;  %vm475_vm5 = vcmp.lt.s32.totalorder %v455_v63, 2 }
  0xea   : > { %v467_v29 = vor.u32 %v466_v11, %v465_v9  ;;  %v470_v30 = vor.u32 %v469_v21, %v468_v12  ;;  %v473_v31 = vor.u32 %v472_v28, %v471_v25  ;;  %vm476_vm6 = vcmp.lt.s32.totalorder %v455_v63, 3 }
  0xeb   : > { %vm477_vm7 = vcmp.lt.s32.totalorder %v455_v63, 4  ;;  %v478_v32 = vsel %vm474_vm4, %v458_v1, %v461_v3  ;;  %v482_v34 = vsel %vm474_vm4, %v461_v3, %v464_v23  ;;  %v1070_v37 = vshrl.u32 %v1069_v57, 23 }
  0xec   : > { %v479_v33 = vsel %vm477_vm7, %v467_v29, 2102212464  ;;  %v483_v35 = vsel %vm477_vm7, %v470_v30, 920167782  ;;  %v486_v36 = vsel %vm474_vm4, %v464_v23, %v467_v29  ;;  %v487_v42 = vsel %vm477_vm7, %v473_v31, 1326507024 }
  0xed   : > { %v480_v38 = vsel %vm476_vm6, %v464_v23, %v479_v33  ;;  %v484_v41 = vsel %vm476_vm6, %v467_v29, %v483_v35  ;;  %v488_v43 = vsel %vm476_vm6, %v470_v30, %v487_v42  ;;  %v858_v48 = vand.u32 2147483647, %v4102_v26 }
  0xee   : > { %v485_v46 = vsel %vm475_vm5, %v482_v34, %v484_v41  ;;  %v489_v50 = vsel %vm475_vm5, %v486_v36, %v488_v43  ;;  %v4155_v62 = vand.u32 31, %v4130_v0  ;;  %v481_v1 = vsel %vm475_vm5, %v478_v32, %v480_v38 }
  0xef   : > { %v4150_v53 = vmul.u32.u64.low %v490_v44, %v485_v46  ;;  %v4151_v55 = vmul.u32.u64.high %v490_v44, %v485_v46, %v4150_v53  ;;  %v4158_v57 = vmul.u32.u64.low %v490_v44, %v489_v50  ;;  %v4159_v2 = vmul.u32.u64.high %v490_v44, %v489_v50, %v4158_v57 }
  0xf0   : > { %v871_v3 = vshrl.u32 %v870_v52, 5  ;;  %v865_v4 = vand.u32 8388607, %v858_v48  ;;  %v875_v51 = vshll.u32 %v3858_v61, %v4125_v59  ;;  %v876_v8 = vshrl.u32 %v3857_v54, %v4140_v22 }
  0xf1   : > { %v878_v9 = vshll.u32 %v3857_v54, %v4125_v59  ;;  %v879_v63 = vshrl.u32 %v3859_v5, %v4140_v22  ;;  %v881_v11 = vshll.u32 %v3859_v5, %v4125_v59  ;;  %v882_v52 = vshrl.u32 %v3860_v10, %v4140_v22 }
  0xf2   : > { %v3412_v12 = vadd.s32 4294967169, %v758_v58  ;;  %v497_v21 = vmul.u32 %v490_v44, %v481_v1  ;;  %v500_v23 = vadd.s32 1, %v4151_v55  ;;  %v877_v25 = vor.u32 %v876_v8, %v875_v51 }
  0xf3   : > { %vm499_vm9 = vc.u32 %v4159_v2, %v4150_v53  ;;  %v880_v28 = vor.u32 %v879_v63, %v878_v9  ;;  %v883_v29 = vor.u32 %v882_v52, %v881_v11  ;;  %v884_v30 = vshll.u32 %v3860_v10, %v4125_v59 }
  0xf4   : > { %v501_v31 = vsel %vm499_vm9, %v500_v23, %v4151_v55  ;;  %v885_v32 = vshrl.u32 %v3861_v16, %v4140_v22  ;;  %v887_v58 = vshll.u32 %v3861_v16, %v4125_v59  ;;  %v888_v33 = vshrl.u32 %v3862_v27, %v4140_v22 }
  0xf5   : > { %v3424_v34 = vadd.s32 4294967169, %v1070_v37  ;;  %v502_v35 = vadd.s32 %v501_v31, %v497_v21  ;;  %v866_v36 = vor.u32 8388608, %v865_v4  ;;  %vm890_vm10 = vcmp.lt.s32.totalorder %v871_v3, 1 }
  0xf6   : > { %v886_v38 = vor.u32 %v885_v32, %v884_v30  ;;  %v889_v41 = vor.u32 %v888_v33, %v887_v58  ;;  %vm891_vm11 = vcmp.lt.s32.totalorder %v871_v3, 2  ;;  %vm892_vm12 = vcmp.lt.s32.totalorder %v871_v3, 3 }
  0xf7   : > { %v503_v42 = vadd.s32 536870912, %v502_v35  ;;  %vm893_vm13 = vcmp.lt.s32.totalorder %v871_v3, 4  ;;  %v898_v44 = vsel %vm890_vm10, %v877_v25, %v880_v28  ;;  %v902_v46 = vsel %vm890_vm10, %v880_v28, %v883_v29 }
  0xf8   : > { %v895_v43 = vsel %vm893_vm13, %v883_v29, 2102212464  ;;  %v899_v50 = vsel %vm893_vm13, %v886_v38, 920167782  ;;  %v903_v59 = vsel %vm893_vm13, %v889_v41, 1326507024  ;;  %v874_v51 = vshrl.u32 %v3858_v61, %v4140_v22 }
  0xf9   : > { %v4190_v55 = vshrl.u32 %v503_v42, 30  ;;  %v900_v37 = vsel %vm892_vm12, %v883_v29, %v899_v50  ;;  %v904_v1 = vsel %vm892_vm12, %v886_v38, %v903_v59  ;;  %v906_v57 = vshll.u32 %v866_v36, 8 }
  0xfa   : > { %v764_v4 = vadd.s32 1, %v3412_v12  ;;  %v901_v8 = vsel %vm891_vm11, %v898_v44, %v900_v37  ;;  %v905_v9 = vsel %vm891_vm11, %v902_v46, %v904_v1  ;;  %v1076_v63 = vadd.s32 1, %v3424_v34 }
  0xfb   : > { %v505_v11 = vshll.u32 %v4190_v55, 30  ;;  %v4199_v52 = vmul.u32.u64.low %v906_v57, %v905_v9  ;;  %v4200_v21 = vmul.u32.u64.high %v906_v57, %v905_v9, %v4199_v52  ;;  %v894_v23 = vsel %vm890_vm10, %v874_v51, %v877_v25 }
  0xfc   : > { %v896_v29 = vsel %vm892_vm12, %v880_v28, %v895_v43  ;;  %v4204_v30 = vmul.u32.u64.low %v906_v57, %v901_v8  ;;  %v4205_v31 = vmul.u32.u64.high %v906_v57, %v901_v8, %v4204_v30  ;;  %v4211_v22 = vand.u32 31, %v4147_v49 }
  0xfd   : > { %v4208_v12 = vsub.s32 %v502_v35, %v505_v11  ;;  %v4216_v32 = vsel %vm557_vm8, %v4122_v56, 0  ;;  %v3420_v58 = vadd.s32 4294967169, %v4127_v60  ;;  %v897_v28 = vsel %vm891_vm11, %v894_v23, %v896_v29 }
  0xfe   : > { %vm915_vm14 = vc.u32 %v4200_v21, %v4204_v30  ;;  %v4224_v33 = vsub.s32 32, %v4155_v62  ;;  %vm765_vm15 = vcmp.gt.s32.totalorder %v764_v4, 0  ;;  %vm1077_vm0 = vcmp.gt.s32.totalorder %v1076_v63, 0 }
  0xff   : > { %v508_v25 = vsub.s32 0, %v4208_v12  ;;  %v916_v34 = vadd.s32 1, %v4205_v31  ;;  %v4228_v35 = vshrl.u32 %v4147_v49, 5  ;;  %v4231_v56 = vand.u32 31, %v4216_v32 }
 0x100   : > { %v650_v3 = vand.u32 2147483647, %v4091_v19  ;;  %v4236_v36 = vsub.s32 32, %v4211_v22  ;;  %v4239_v38 = vshrl.u32 %v4130_v0, 5  ;;  %v913_v41 = vmul.u32 %v906_v57, %v897_v28 }
 0x101   : > { %v3401_v60 = vmin.u32 %v508_v25, %v4208_v12  ;;  %v917_v42 = vsel %vm915_vm14, %v916_v34, %v4205_v31  ;;  %v4242_v44 = vsel %vm765_vm15, %v764_v4, 0  ;;  %v4244_v49 = vadd.s32 1, %v3420_v58 }
 0x102   : > { %v4246_v46 = vsel %vm1077_vm0, %v1076_v63, 0  ;;  %v498_v50 = vadd.s32 %v4150_v53, %v4159_v2  ;;  %v918_v59 = vadd.s32 %v917_v42, %v913_v41  ;;  %v668_v37 = vshrl.u32 %v3857_v54, %v4224_v33 }
 0x103   : > { %v510_v43 = vclz %v3401_v60  ;;  %v671_v0 = vshrl.u32 %v3859_v5, %v4224_v33  ;;  %v674_v57 = vshrl.u32 %v3860_v10, %v4224_v33  ;;  %v676_v4 = vshll.u32 %v3860_v10, %v4155_v62 }
 0x104   : > { %v677_v51 = vshrl.u32 %v3861_v16, %v4224_v33  ;;  %vm444_vm1 = vcmp.lt.s32.totalorder %v4088_v18, 0  ;;  %v919_v53 = vadd.s32 536870912, %v918_v59  ;;  %v657_v2 = vand.u32 8388607, %v650_v3 }
 0x105   : > { %v3402_v1 = vadd.s32 4294967294, %v510_v43  ;;  %v667_v8 = vshll.u32 %v3858_v61, %v4155_v62  ;;  %v680_v9 = vshrl.u32 %v3862_v27, %v4224_v33  ;;  %v670_v63 = vshll.u32 %v3857_v54, %v4155_v62 }
 0x106   : > { %v673_v11 = vshll.u32 %v3859_v5, %v4155_v62  ;;  %v678_v52 = vor.u32 %v677_v51, %v676_v4  ;;  %v4271_v29 = vshrl.u32 %v919_v53, 30  ;;  %v679_v58 = vshll.u32 %v3861_v16, %v4155_v62 }
 0x107   : > { %vm3403_vm2 = vcmp.lt.s32.totalorder %v3402_v1, 0  ;;  %v669_v31 = vor.u32 %v668_v37, %v667_v8  ;;  %v672_v60 = vor.u32 %v671_v0, %v670_v63  ;;  %v528_v42 = vsub.s32 4, %v4190_v55 }
 0x108   : > { %v513_v23 = vsel %vm3403_vm2, 0, %v3402_v1  ;;  %v675_v41 = vor.u32 %v674_v57, %v673_v11  ;;  %v921_v43 = vshll.u32 %v4271_v29, 30  ;;  %v681_v1 = vor.u32 %v680_v9, %v679_v58 }
 0x109   : > { %v514_v28 = vsub.s32 32, %v513_v23  ;;  %v518_v34 = vsub.s32 4294967266, %v513_v23  ;;  %vm685_vm4 = vcmp.lt.s32.totalorder %v4239_v38, 4  ;;  %v515_v37 = vshll.u32 %v4208_v12, %v513_v23 }
 0x10a   : > { %v691_v45 = vsel %vm685_vm4, %v678_v52, 920167782  ;;  %v4287_v51 = vsub.s32 %v918_v59, %v921_v43  ;;  %v658_v53 = vor.u32 8388608, %v657_v2  ;;  %vm682_vm5 = vcmp.lt.s32.totalorder %v4239_v38, 1 }
 0x10b   : > { %v516_v62 = vshrl.u32 %v498_v50, %v514_v28  ;;  %v519_v4 = vadd.s32 127, %v518_v34  ;;  %vm684_vm6 = vcmp.lt.s32.totalorder %v4239_v38, 3  ;;  %v690_v8 = vsel %vm682_vm5, %v669_v31, %v672_v60 }
 0x10c   : > { %v692_v12 = vsel %vm684_vm6, %v675_v41, %v691_v45  ;;  %v4296_v50 = vand.u32 31, %v4246_v46  ;;  %v924_v9 = vsub.s32 0, %v4287_v51  ;;  %v694_v59 = vsel %vm682_vm5, %v672_v60, %v675_v41 }
 0x10d   : > { %v517_v0 = vor.u32 %v516_v62, %v515_v37  ;;  %v520_v57 = vshll.u32 %v519_v4, 23  ;;  %v695_v2 = vsel %vm685_vm4, %v681_v1, 1326507024  ;;  %v529_v11 = vsel %vm444_vm1, %v528_v42, %v4190_v55 }
 0x10e   : > { %vm683_vm7 = vcmp.lt.s32.totalorder %v4239_v38, 2  ;;  %v696_v23 = vsel %vm684_vm6, %v678_v52, %v695_v2  ;;  %v3417_v58 = vmin.u32 %v924_v9, %v4287_v51  ;;  %v666_v28 = vshrl.u32 %v3858_v61, %v4224_v33 }
 0x10f   : > { %v521_v63 = vor.u32 4788187, %v520_v57  ;;  %v687_v34 = vsel %vm685_vm4, %v675_v41, 2102212464  ;;  %v693_v43 = vsel %vm683_vm7, %v690_v8, %v692_v12  ;;  %v524_v37 = vcvt.s32.f32 %v517_v0 }
 0x110   : > { %v697_v55 = vsel %vm683_vm7, %v694_v59, %v696_v23  ;;  %v698_v42 = vshll.u32 %v658_v53, 8  ;;  %v531_v52 = vsel %vm4277_vm3, 0, %v529_v11  ;;  %v926_v62 = vclz %v3417_v58 }
 0x111   : > { %v522_v1 = vand.u32 2147483647, %v521_v63  ;;  %v944_v4 = vsub.s32 4, %v4271_v29  ;;  %v686_v33 = vsel %vm682_vm5, %v666_v28, %v669_v31  ;;  %v688_v41 = vsel %vm684_vm6, %v672_v60, %v687_v34 }
 0x112   : > { %v4325_v57 = vmul.u32.u64.low %v698_v42, %v697_v55  ;;  %v4326_v8 = vmul.u32.u64.high %v698_v42, %v697_v55, %v4325_v57  ;;  %v4329_v0 = vshrl.u32 %v4242_v44, 5  ;;  %v3418_v53 = vadd.s32 4294967294, %v926_v62 }
 0x113   : > { %v525_v45 = vmul.f32 %v524_v37, %v522_v1  ;;  %v4331_v12 = vmul.u32.u64.low %v698_v42, %v693_v43  ;;  %v4332_v9 = vmul.u32.u64.high %v698_v42, %v693_v43, %v4331_v12  ;;  %v4336_v59 = vshrl.u32 %v4246_v46, 5 }
 0x114   : > { %v4339_v31 = vsub.s32 32, %v4296_v50  ;;  %vm4343_vm8 = vcmp.le.f32.partialorder %v858_v48, 0.7853982  ;;  %v535_v63 = vadd.s32 3, %v531_v52  ;;  %vm860_vm9 = vcmp.lt.s32.totalorder %v4102_v26, 0 }
 0x115   : > { %v526_v2 = vxor.u32 2147483648, %v525_v45  ;;  %vm3419_vm10 = vcmp.lt.s32.totalorder %v3418_v53, 0  ;;  %v689_v11 = vsel %vm683_vm7, %v686_v33, %v688_v41  ;;  %v914_v23 = vadd.s32 %v4204_v30, %v4200_v21 }
 0x116   : > { %v929_v58 = vsel %vm3419_vm10, 0, %v3418_v53  ;;  %v945_v48 = vsel %vm860_vm9, %v944_v4, %v4271_v29  ;;  %vm707_vm11 = vc.u32 %v4326_v8, %v4331_v12  ;;  %v4362_v38 = vand.u32 3, %v531_v52 }
 0x117   : > { %v527_v46 = vsel %vm444_vm1, %v526_v2, %v525_v45  ;;  %v930_v34 = vsub.s32 32, %v929_v58  ;;  %v934_v43 = vsub.s32 4294967266, %v929_v58  ;;  %v705_v1 = vmul.u32 %v698_v42, %v689_v11 }
 0x118   : > { %v530_v28 = vsel %vm4277_vm3, %v4088_v18, %v527_v46  ;;  %v708_v21 = vadd.s32 1, %v4332_v9  ;;  %v931_v30 = vshll.u32 %v4287_v51, %v929_v58  ;;  %v4366_v55 = vand.u32 3, %v535_v63 }
 0x119   : > { %3680 = vcosq.f32 %v530_v28  ;;  %v932_v37 = vshrl.u32 %v914_v23, %v930_v34  ;;  %v935_v29 = vadd.s32 127, %v934_v43  ;;  %v947_v25 = vsel %vm4343_vm8, 0, %v945_v48 }
 0x11a   : > { %3682 = vsinq.f32 %v530_v28  ;;  %v709_v62 = vsel %vm707_vm11, %v708_v21, %v4332_v9  ;;  %v1066_v4 = vand.u32 2147483647, %v4115_v47  ;;  %v1084_v42 = vshrl.u32 %v3857_v54, %v4339_v31 }
 0x11b   : > { %v933_v33 = vor.u32 %v932_v37, %v931_v30  ;;  %v936_v52 = vshll.u32 %v935_v29, 23  ;;  %v710_v45 = vadd.s32 %v709_v62, %v705_v1  ;;  %v1087_v51 = vshrl.u32 %v3859_v5, %v4339_v31 }
 0x11c   : > { %v1090_v41 = vshrl.u32 %v3860_v10, %v4339_v31  ;;  %v1092_v57 = vshll.u32 %v3860_v10, %v4296_v50  ;;  %v1093_v53 = vshrl.u32 %v3861_v16, %v4339_v31  ;;  %vm1368_vm12 = vcmp.eq.s32.totalorder %v4362_v38, 0 }
 0x11d   : > { %v937_v9 = vor.u32 4788187, %v936_v52  ;;  %v711_v2 = vadd.s32 536870912, %v710_v45  ;;  %v1095_v63 = vshll.u32 %v3861_v16, %v4296_v50  ;;  %v1096_v11 = vshrl.u32 %v3862_v27, %v4339_v31 }
 0x11e   : > { %vm1367_vm13 = vcmp.lt.s32.totalorder %v4362_v38, 2  ;;  %v1083_v46 = vshll.u32 %v3858_v61, %v4296_v50  ;;  %v1086_v23 = vshll.u32 %v3857_v54, %v4296_v50  ;;  %v1089_v58 = vshll.u32 %v3859_v5, %v4296_v50 }
 0x11f   : > { %v1094_v48 = vor.u32 %v1093_v53, %v1092_v57  ;;  %vm534_vm14 = vweird.f32 %v4088_v18  ;;  %v938_v28 = vand.u32 2147483647, %v937_v9  ;;  %v940_v34 = vcvt.s32.f32 %v933_v33 }
 0x120   : > { %v4395_v43 = vshrl.u32 %v711_v2, 30  ;;  %v1097_v1 = vor.u32 %v1096_v11, %v1095_v63  ;;  %vm1371_vm15 = vcmp.eq.s32.totalorder %v4362_v38, 2  ;;  %v1073_v21 = vand.u32 8388607, %v1066_v4 }
 0x121   : > { %v1085_v30 = vor.u32 %v1084_v42, %v1083_v46  ;;  %v1088_v37 = vor.u32 %v1087_v51, %v1086_v23  ;;  %v941_v29 = vmul.f32 %v940_v34, %v938_v28  ;;  %v1091_v52 = vor.u32 %v1090_v41, %v1089_v58 }
 0x122   : > { %v713_v62 = vshll.u32 %v4395_v43, 30  ;;  %vm1101_vm0 = vcmp.lt.s32.totalorder %v4336_v59, 4  ;;  %v951_v57 = vadd.s32 3, %v947_v25  ;;  %v4402_v53 = vand.u32 3, %v947_v25 }
 0x123   : > { %v3681_v50 = vpop.eup %3680  ;;  %vm1098_vm1 = vcmp.lt.s32.totalorder %v4336_v59, 1  ;;  %v1107_v33 = vsel %vm1101_vm0, %v1094_v48, 920167782  ;;  %v942_v63 = vxor.u32 2147483648, %v941_v29  ;;  %v1111_v51 = vsel %vm1101_vm0, %v1097_v1, 1326507024 }
 0x124   : > { %v3683_v9 = vpop.eup %3682  ;;  %v542_v2 = vxor.u32 2147483648, %v3681_v50  ;;  %v4407_v42 = vsub.s32 %v710_v45, %v713_v62  ;;  %v1074_v11 = vor.u32 8388608, %v1073_v21  ;;  %vm1100_vm2 = vcmp.lt.s32.totalorder %v4336_v59, 3 }
 0x125   : > { %v539_v41 = vxor.u32 2147483648, %v3683_v9  ;;  %v1106_v25 = vsel %vm1098_vm1, %v1085_v30, %v1088_v37  ;;  %v943_v46 = vsel %vm860_vm9, %v942_v63, %v941_v29  ;;  %v1108_v45 = vsel %vm1100_vm2, %v1091_v52, %v1107_v33 }
 0x126   : > { %v1373_v23 = vsel %vm1371_vm15, %v542_v2, %v3683_v9  ;;  %v716_v58 = vsub.s32 0, %v4407_v42  ;;  %v946_v28 = vsel %vm4343_vm8, %v4102_v26, %v943_v46  ;;  %v1110_v1 = vsel %vm1098_vm1, %v1088_v37, %v1091_v52 }
 0x127   : > { %v1370_v34 = vsel %vm1368_vm12, %v3681_v50, %v539_v41  ;;  %v1112_v21 = vsel %vm1100_vm2, %v1094_v48, %v1111_v51  ;;  %3684 = vcosq.f32 %v946_v28  ;;  %v1082_v33 = vshrl.u32 %v3858_v61, %v4339_v31 }
 0x128   : > { %v1374_v29 = vsel %vm1367_vm13, %v1370_v34, %v1373_v23  ;;  %v3409_v62 = vmin.u32 %v716_v58, %v4407_v42  ;;  %3686 = vsinq.f32 %v946_v28  ;;  %vm1099_vm3 = vcmp.lt.s32.totalorder %v4336_v59, 2 }
 0x129   : > { %v4437_v60 = vsel %vm534_vm14, nan, %v1374_v29  ;;  %v1103_v63 = vsel %vm1101_vm0, %v1091_v52, 2102212464  ;;  %v1109_v38 = vsel %vm1099_vm3, %v1106_v25, %v1108_v45  ;;  %v1113_v51 = vsel %vm1099_vm3, %v1110_v1, %v1112_v21 }
 0x12a   : > { %v718_v48 = vclz %v3409_v62  ;;  %v1114_v46 = vshll.u32 %v1074_v11, 8  ;;  %v4447_v31 = vand.u32 31, %v4242_v44  ;;  %vm537_vm4 = vcmp.lt.s32.totalorder %v4366_v55, 2 }
 0x12b   : > { %v952_v23 = vand.u32 3, %v951_v57  ;;  %v1102_v58 = vsel %vm1098_vm1, %v1082_v33, %v1085_v30  ;;  %vm652_vm5 = vcmp.lt.s32.totalorder %v4091_v19, 0  ;;  %v1104_v28 = vsel %vm1100_vm2, %v1088_v37, %v1103_v63 }
 0x12c   : > { %v3410_v52 = vadd.s32 4294967294, %v718_v48  ;;  %v4455_v25 = vmul.u32.u64.low %v1114_v46, %v1113_v51  ;;  %v4456_v45 = vmul.u32.u64.high %v1114_v46, %v1113_v51, %v4455_v25  ;;  %vm538_vm6 = vcmp.eq.s32.totalorder %v4366_v55, 0 }
 0x12d   : > { %vm541_vm7 = vcmp.eq.s32.totalorder %v4366_v55, 2  ;;  %v4460_v44 = vmul.u32.u64.low %v1114_v46, %v1109_v38  ;;  %v4461_v11 = vmul.u32.u64.high %v1114_v46, %v1109_v38, %v4460_v44  ;;  %v540_v57 = vsel %vm538_vm6, %v3681_v50, %v539_v41 }
 0x12e   : > { %v543_v34 = vsel %vm541_vm7, %v542_v2, %v3683_v9  ;;  %vm1779_vm8 = vcmp.lt.s32.totalorder %v4402_v53, 2  ;;  %vm3411_vm9 = vcmp.lt.s32.totalorder %v3410_v52, 0  ;;  %vm950_vm10 = vweird.f32 %v4102_v26 }
 0x12f   : > { %vm1780_vm11 = vcmp.eq.s32.totalorder %v4402_v53, 0  ;;  %vm1783_vm12 = vcmp.eq.s32.totalorder %v4402_v53, 2  ;;  %v721_v30 = vsel %vm3411_vm9, 0, %v3410_v52  ;;  %v1105_v37 = vsel %vm1099_vm3, %v1102_v58, %v1104_v28 }
 0x130   : > { %vm953_vm13 = vcmp.lt.s32.totalorder %v952_v23, 2  ;;  %v706_v1 = vadd.s32 %v4331_v12, %v4326_v8  ;;  %v722_v21 = vsub.s32 32, %v721_v30  ;;  %v726_v50 = vsub.s32 4294967266, %v721_v30 }
 0x131   : > { %v544_v9 = vsel %vm537_vm4, %v540_v57, %v543_v34  ;;  %v736_v2 = vsub.s32 4, %v4395_v43  ;;  %vm1123_vm15 = vc.u32 %v4456_v45, %v4460_v44  ;;  %v1124_v41 = vadd.s32 1, %v4461_v11  ;;  %v3685_v29 = vpop.eup %3684 }
 0x132   : > { %v723_v59 = vshll.u32 %v4407_v42, %v721_v30  ;;  %v724_v62 = vshrl.u32 %v706_v1, %v722_v21  ;;  %v727_v33 = vadd.s32 127, %v726_v50  ;;  %v1121_v63 = vmul.u32 %v1114_v46, %v1105_v37  ;;  %v3687_v48 = vpop.eup %3686 }
 0x133   : > { %vm954_vm0 = vcmp.eq.s32.totalorder %v952_v23, 0  ;;  %vm957_vm1 = vcmp.eq.s32.totalorder %v952_v23, 2  ;;  %v958_v8 = vxor.u32 2147483648, %v3685_v29  ;;  %v1125_v12 = vsel %vm1123_vm15, %v1124_v41, %v4461_v11 }
 0x134   : > { %v955_v55 = vxor.u32 2147483648, %v3687_v48  ;;  %v725_v38 = vor.u32 %v724_v62, %v723_v59  ;;  %v728_v51 = vshll.u32 %v727_v33, 23  ;;  %v1126_v58 = vadd.s32 %v1125_v12, %v1121_v63 }
 0x135   : > { %v4482_v52 = vsel %vm534_vm14, nan, %v544_v9  ;;  %v959_v28 = vsel %vm957_vm1, %v958_v8, %v3687_v48  ;;  %v1785_v42 = vsel %vm1783_vm12, %v958_v8, %v3687_v48  ;;  %v737_v46 = vsel %vm652_vm5, %v736_v2, %v4395_v43 }
 0x136   : > { %v956_v25 = vsel %vm954_vm0, %v3685_v29, %v955_v55  ;;  %v1782_v11 = vsel %vm1780_vm11, %v3685_v29, %v955_v55  ;;  %v729_v57 = vor.u32 4788187, %v728_v51  ;;  %v338_v34 = vand.u32 2147483647, %v4094_v20 }
 0x137   : > { %v960_v30 = vsel %vm953_vm13, %v956_v25, %v959_v28  ;;  %v1786_v18 = vsel %vm1779_vm8, %v1782_v11, %v1785_v42  ;;  %v1127_v37 = vadd.s32 536870912, %v1126_v58  ;;  %v356_v1 = vshrl.u32 %v3857_v54, %v4236_v36 }
 0x138   : > { %v4499_v21 = vsel %vm950_vm10, nan, %v960_v30  ;;  %v4503_v43 = vsel %vm950_vm10, nan, %v1786_v18  ;;  %v730_v50 = vand.u32 2147483647, %v729_v57  ;;  %v732_v9 = vcvt.s32.f32 %v725_v38 }
 0x139   : > { %v3485_v23 = vpack.c.bf16 %v4499_v21, %v4482_v52  ;;  %v4507_v2 = vshrl.u32 %v1127_v37, 30  ;;  %v359_v53 = vshrl.u32 %v3859_v5, %v4236_v36  ;;  %v365_v41 = vshrl.u32 %v3861_v16, %v4236_v36 }
 0x13a   : > { %v733_v29 = vmul.f32 %v732_v9, %v730_v50  ;;  %v362_v59 = vshrl.u32 %v3860_v10, %v4236_v36  ;;  %v364_v26 = vshll.u32 %v3860_v10, %v4211_v22  ;;  %v368_v62 = vshrl.u32 %v3862_v27, %v4236_v36 }
 0x13b   : > { %3486 = vmatprep.subr.bf16.mxu0 %v3485_v23  ;;  %v1129_v33 = vshll.u32 %v4507_v2, 30  ;;  %v345_v63 = vand.u32 8388607, %v338_v34  ;;  %v355_v48 = vshll.u32 %v3858_v61, %v4211_v22  ;;  %v358_v8 = vshll.u32 %v3857_v54, %v4211_v22 }
 0x13c   : > { %v734_v12 = vxor.u32 2147483648, %v733_v29  ;;  %v361_v55 = vshll.u32 %v3859_v5, %v4211_v22  ;;  %v366_v38 = vor.u32 %v365_v41, %v364_v26  ;;  %v367_v51 = vshll.u32 %v3861_v16, %v4211_v22 }
 0x13d   : > { %v4531_v28 = vsub.s32 32, %v4447_v31  ;;  %v4533_v42 = vsub.s32 %v1126_v58, %v1129_v33  ;;  %v357_v25 = vor.u32 %v356_v1, %v355_v48  ;;  %v360_v11 = vor.u32 %v359_v53, %v358_v8 }
 0x13e   : > { %vm651_vm14 = vcmp.le.f32.partialorder %v650_v3, 0.7853982  ;;  %v735_v57 = vsel %vm652_vm5, %v734_v12, %v733_v29  ;;  %v363_v30 = vor.u32 %v362_v59, %v361_v55  ;;  %v369_v18 = vor.u32 %v368_v62, %v367_v51 }
 0x13f   : > { %v738_v37 = vsel %vm651_vm14, %v4091_v19, %v735_v57  ;;  %v739_v50 = vsel %vm651_vm14, 0, %v737_v46  ;;  %v1132_v22 = vsub.s32 0, %v4533_v42  ;;  %vm373_vm2 = vcmp.lt.s32.totalorder %v4228_v35, 4 }
 0x140   : > { %3688 = vcosq.f32 %v738_v37  ;;  %v346_v58 = vor.u32 8388608, %v345_v63  ;;  %vm370_vm3 = vcmp.lt.s32.totalorder %v4228_v35, 1  ;;  %v379_v1 = vsel %vm373_vm2, %v366_v38, 920167782 }
 0x141   : > { %3690 = vsinq.f32 %v738_v37  ;;  %v3425_v3 = vmin.u32 %v1132_v22, %v4533_v42  ;;  %vm372_vm4 = vcmp.lt.s32.totalorder %v4228_v35, 3  ;;  %v378_v9 = vsel %vm370_vm3, %v357_v25, %v360_v11 }
 0x142   : > { %v375_v23 = vsel %vm373_vm2, %v363_v30, 2102212464  ;;  %v380_v46 = vsel %vm372_vm4, %v363_v30, %v379_v1  ;;  %v382_v53 = vsel %vm370_vm3, %v360_v11, %v363_v30  ;;  %v383_v41 = vsel %vm373_vm2, %v369_v18, 1326507024 }
 0x143   : > { %v1134_v29 = vclz %v3425_v3  ;;  %v1572_v59 = vand.u32 3, %v739_v50  ;;  %v354_v26 = vshrl.u32 %v3858_v61, %v4236_v36  ;;  %vm371_vm5 = vcmp.lt.s32.totalorder %v4228_v35, 2 }
 0x144   : > { %v1152_v62 = vsub.s32 4, %v4507_v2  ;;  %v381_v33 = vsel %vm371_vm5, %v378_v9, %v380_v46  ;;  %v384_v63 = vsel %vm372_vm4, %v366_v38, %v383_v41  ;;  %v386_v48 = vshll.u32 %v346_v58, 8 }
 0x145   : > { %v3426_v8 = vadd.s32 4294967294, %v1134_v29  ;;  %v374_v12 = vsel %vm370_vm3, %v354_v26, %v357_v25  ;;  %v376_v55 = vsel %vm372_vm4, %v360_v11, %v375_v23  ;;  %v385_v36 = vsel %vm371_vm5, %v382_v53, %v384_v63 }
 0x146   : > { %v4565_v51 = vmul.u32.u64.low %v386_v48, %v385_v36  ;;  %v4566_v57 = vmul.u32.u64.high %v386_v48, %v385_v36, %v4565_v51  ;;  %v4568_v30 = vmul.u32.u64.low %v386_v48, %v381_v33  ;;  %v4569_v18 = vmul.u32.u64.high %v386_v48, %v381_v33, %v4568_v30 }
 0x147   : > { %vm742_vm6 = vweird.f32 %v4091_v19  ;;  %v743_v38 = vadd.s32 3, %v739_v50  ;;  %vm1068_vm7 = vcmp.lt.s32.totalorder %v4115_v47, 0  ;;  %vm3427_vm8 = vcmp.lt.s32.totalorder %v3426_v8, 0 }
 0x148   : > { %vm1573_vm9 = vcmp.lt.s32.totalorder %v1572_v59, 2  ;;  %v1122_v25 = vadd.s32 %v4460_v44, %v4456_v45  ;;  %v1137_v11 = vsel %vm3427_vm8, 0, %v3426_v8  ;;  %vm1574_vm10 = vcmp.eq.s32.totalorder %v1572_v59, 0 }
 0x149   : > { %vm1577_vm11 = vcmp.eq.s32.totalorder %v1572_v59, 2  ;;  %vm4578_vm12 = vcmp.le.f32.partialorder %v1066_v4, 0.7853982  ;;  %v1138_v22 = vsub.s32 32, %v1137_v11  ;;  %v1142_v58 = vsub.s32 4294967266, %v1137_v11 }
 0x14a   : > { %v1153_v50 = vsel %vm1068_vm7, %v1152_v62, %v4507_v2  ;;  %v377_v1 = vsel %vm371_vm5, %v374_v12, %v376_v55  ;;  %v4587_v3 = vpop.eup %3688  ;;  %vm395_vm13 = vc.u32 %v4566_v57, %v4568_v30  ;;  %v396_v45 = vadd.s32 1, %v4569_v18 }
 0x14b   : > { %v754_v4 = vand.u32 2147483647, %v4108_v39  ;;  %v772_v44 = vshrl.u32 %v3857_v54, %v4531_v28  ;;  %v4595_v9 = vpop.eup %3690  ;;  %v750_v23 = vxor.u32 2147483648, %v4587_v3  ;;  %v1139_v2 = vshll.u32 %v4533_v42, %v1137_v11 }
 0x14c   : > { %v1140_v35 = vshrl.u32 %v1122_v25, %v1138_v22  ;;  %v1143_v46 = vadd.s32 127, %v1142_v58  ;;  %v747_v53 = vxor.u32 2147483648, %v4595_v9  ;;  %v393_v41 = vmul.u32 %v386_v48, %v377_v1 }
 0x14d   : > { %v397_v29 = vsel %vm395_vm13, %v396_v45, %v4569_v18  ;;  %v775_v26 = vshrl.u32 %v3859_v5, %v4531_v28  ;;  %v1579_v63 = vsel %vm1577_vm11, %v750_v23, %v4595_v9  ;;  %v771_v42 = vshll.u32 %v3858_v61, %v4447_v31 }
 0x14e   : > { %v1141_v62 = vor.u32 %v1140_v35, %v1139_v2  ;;  %v1144_v33 = vshll.u32 %v1143_v46, 23  ;;  %v1576_v48 = vsel %vm1574_vm10, %v4587_v3, %v747_v53  ;;  %v398_v8 = vadd.s32 %v397_v29, %v393_v41 }
 0x14f   : > { %v761_v12 = vand.u32 8388607, %v754_v4  ;;  %v774_v55 = vshll.u32 %v3857_v54, %v4447_v31  ;;  %v1580_v51 = vsel %vm1573_vm9, %v1576_v48, %v1579_v63  ;;  %v773_v18 = vor.u32 %v772_v44, %v771_v42 }
 0x150   : > { %v1145_v36 = vor.u32 4788187, %v1144_v33  ;;  %v777_v25 = vshll.u32 %v3859_v5, %v4447_v31  ;;  %v4622_v11 = vsel %vm742_vm6, nan, %v1580_v51  ;;  %v399_v22 = vadd.s32 536870912, %v398_v8 }
 0x151   : > { %v776_v58 = vor.u32 %v775_v26, %v774_v55  ;;  %v778_v1 = vshrl.u32 %v3860_v10, %v4531_v28  ;;  %v1148_v2 = vcvt.s32.f32 %v1141_v62  ;;  %v780_v35 = vshll.u32 %v3860_v10, %v4447_v31 }
 0x152   : > { %v1146_v45 = vand.u32 2147483647, %v1145_v36  ;;  %v781_v59 = vshrl.u32 %v3861_v16, %v4531_v28  ;;  %vm973_vm15 = vcmp.gt.s32.totalorder %v4244_v49, 0  ;;  %v1155_v44 = vsel %vm4578_vm12, 0, %v1153_v50 }
 0x153   : > { %v4633_v46 = vshrl.u32 %v399_v22, 30  ;;  %v784_v41 = vshrl.u32 %v3862_v27, %v4531_v28  ;;  %v779_v26 = vor.u32 %v778_v1, %v777_v25  ;;  %v783_v62 = vshll.u32 %v3861_v16, %v4447_v31 }
 0x154   : > { %v1149_v29 = vmul.f32 %v1148_v2, %v1146_v45  ;;  %v782_v33 = vor.u32 %v781_v59, %v780_v35  ;;  %v744_v63 = vand.u32 3, %v743_v38  ;;  %v762_v48 = vor.u32 8388608, %v761_v12 }
 0x155   : > { %v401_v42 = vshll.u32 %v4633_v46, 30  ;;  %vm786_vm0 = vcmp.lt.s32.totalorder %v4329_v0, 1  ;;  %v785_v36 = vor.u32 %v784_v41, %v783_v62  ;;  %vm789_vm1 = vcmp.lt.s32.totalorder %v4329_v0, 4 }
 0x156   : > { %v1150_v55 = vxor.u32 2147483648, %v1149_v29  ;;  %v794_v50 = vsel %vm786_vm0, %v773_v18, %v776_v58  ;;  %v1159_v51 = vadd.s32 3, %v1155_v44  ;;  %vm788_vm14 = vcmp.lt.s32.totalorder %v4329_v0, 3 }
 0x157   : > { %v4644_v22 = vsub.s32 %v398_v8, %v401_v42  ;;  %v795_v31 = vsel %vm789_vm1, %v782_v33, 920167782  ;;  %v770_v12 = vshrl.u32 %v3858_v61, %v4531_v28  ;;  %vm787_vm2 = vcmp.lt.s32.totalorder %v4329_v0, 2  ;;  %v295_v0 = vld [vmem:[%s5584_s5] sm:$0xff] }
 0x158   : > { %v1151_v38 = vsel %vm1068_vm7, %v1150_v55, %v1149_v29  ;;  %v796_v25 = vsel %vm788_vm14, %v779_v26, %v795_v31  ;;  %v791_v45 = vsel %vm789_vm1, %v779_v26, 2102212464  ;;  %v798_v28 = vsel %vm786_vm0, %v776_v58, %v779_v26  ;;  %2203 = vperm.xlu1 %3663, %v295_v0  }
 0x159   : > { %v1154_v8 = vsel %vm4578_vm12, %v4115_v47, %v1151_v38  ;;  %v404_v1 = vsub.s32 0, %v4644_v22  ;;  %v797_v2 = vsel %vm787_vm2, %v794_v50, %v796_v25  ;;  %v799_v35 = vsel %vm789_vm1, %v785_v36, 1326507024 }
 0x15a   : > { %3692 = vcosq.f32 %v1154_v8  ;;  %v802_v59 = vshll.u32 %v762_v48, 8  ;;  %v790_v41 = vsel %vm786_vm0, %v770_v12, %v773_v18  ;;  %v800_v29 = vsel %vm788_vm14, %v782_v33, %v799_v35 }
 0x15b   : > { %3694 = vsinq.f32 %v1154_v8  ;;  %v3397_v37 = vmin.u32 %v404_v1, %v4644_v22  ;;  %v792_v62 = vsel %vm788_vm14, %v776_v58, %v791_v45  ;;  %v801_v42 = vsel %vm787_vm2, %v798_v28, %v800_v29 }
 0x15c   : > { %v4677_v26 = vmul.u32.u64.low %v802_v59, %v797_v2  ;;  %v4678_v55 = vmul.u32.u64.high %v802_v59, %v797_v2, %v4677_v26  ;;  %v4682_v48 = vshrl.u32 %v4216_v32, 5  ;;  %v1984_v36 = vand.u32 3, %v1155_v44 }
 0x15d   : > { %v406_v50 = vclz %v3397_v37  ;;  %v4685_v18 = vsub.s32 32, %v4231_v56  ;;  %v4690_v33 = vsel %vm973_vm15, %v4244_v49, 0  ;;  %vm746_vm3 = vcmp.eq.s32.totalorder %v744_v63, 0 }
 0x15e   : > { %v4692_v58 = vmul.u32.u64.low %v802_v59, %v801_v42  ;;  %v4693_v31 = vmul.u32.u64.high %v802_v59, %v801_v42, %v4692_v58  ;;  %vm749_vm4 = vcmp.eq.s32.totalorder %v744_v63, 2  ;;  %v793_v32 = vsel %vm787_vm2, %v790_v41, %v792_v62 }
 0x15f   : > { %v3398_v38 = vadd.s32 4294967294, %v406_v50  ;;  %v748_v44 = vsel %vm746_vm3, %v4587_v3, %v747_v53  ;;  %v751_v12 = vsel %vm749_vm4, %v750_v23, %v4595_v9  ;;  %v1160_v25 = vand.u32 3, %v1159_v51  ;;  %v296_v51 = vld [vmem:[%s5584_s5 + $0x8] sm:$0xff]  ;;  %v298_v58 = vld [vmem:[%s5584_s5 + $0x18] sm:$0xff] }
 0x160   : > { %v812_v49 = vadd.s32 1, %v4678_v55  ;;  %vm745_vm5 = vcmp.lt.s32.totalorder %v744_v63, 2  ;;  %vm1158_vm7 = vweird.f32 %v4115_v47  ;;  %vm1985_vm8 = vcmp.lt.s32.totalorder %v1984_v36, 2  ;;  %2208 = vperm.xlu1 %3663, %v296_v51  }
 0x161   : > { %vm1986_vm9 = vcmp.eq.s32.totalorder %v1984_v36, 0  ;;  %vm3399_vm10 = vcmp.lt.s32.totalorder %v3398_v38, 0  ;;  %v394_v53 = vadd.s32 %v4568_v30, %v4566_v57  ;;  %v809_v1 = vmul.u32 %v802_v59, %v793_v32 }
 0x162   : > { %v409_v8 = vsel %vm3399_vm10, 0, %v3398_v38  ;;  %vm811_vm11 = vc.u32 %v4693_v31, %v4677_v26  ;;  %v752_v3 = vsel %vm745_vm5, %v748_v44, %v751_v12  ;;  %vm1161_vm12 = vcmp.lt.s32.totalorder %v1160_v25, 2 }
 0x163   : > { %v410_v9 = vsub.s32 32, %v409_v8  ;;  %v414_v23 = vsub.s32 4294967266, %v409_v8  ;;  %v813_v63 = vsel %vm811_vm11, %v812_v49, %v4678_v55  ;;  %vm1162_vm13 = vcmp.eq.s32.totalorder %v1160_v25, 0 }
 0x164   : > { %v3693_v45 = vpop.eup %3692  ;;  %vm1989_vm15 = vcmp.eq.s32.totalorder %v1984_v36, 2  ;;  %v814_v57 = vadd.s32 %v813_v63, %v809_v1  ;;  %vm1165_vm0 = vcmp.eq.s32.totalorder %v1160_v25, 2  ;;  %v4718_v59 = vsel %vm742_vm6, nan, %v752_v3  ;;  %2218 = vperm.xlu1 %3663, %v298_v58  }
 0x165   : > { %v3695_v30 = vpop.eup %3694  ;;  %v1166_v2 = vxor.u32 2147483648, %v3693_v45  ;;  %v412_v28 = vshrl.u32 %v394_v53, %v410_v9  ;;  %v415_v35 = vadd.s32 127, %v414_v23  ;;  %v424_v41 = vsub.s32 4, %v4633_v46 }
 0x166   : > { %v1163_v37 = vxor.u32 2147483648, %v3695_v30  ;;  %v815_v29 = vadd.s32 536870912, %v814_v57  ;;  %v411_v55 = vshll.u32 %v4644_v22, %v409_v8  ;;  %v546_v44 = vand.u32 2147483647, %v4099_v24 }
 0x167   : > { %v1167_v62 = vsel %vm1165_vm0, %v1166_v2, %v3695_v30  ;;  %v1991_v42 = vsel %vm1989_vm15, %v1166_v2, %v3695_v30  ;;  %v416_v50 = vshll.u32 %v415_v35, 23  ;;  %v564_v3 = vshrl.u32 %v3857_v54, %v4685_v18 }
 0x168   : > { %v1164_v38 = vsel %vm1162_vm13, %v3693_v45, %v1163_v37  ;;  %v1988_v19 = vsel %vm1986_vm9, %v3693_v45, %v1163_v37  ;;  %v4727_v32 = vshrl.u32 %v815_v29, 30  ;;  %v413_v0 = vor.u32 %v412_v28, %v411_v55 }
 0x169   : > { %v1168_v12 = vsel %vm1161_vm12, %v1164_v38, %v1167_v62  ;;  %v1992_v49 = vsel %vm1985_vm8, %v1988_v19, %v1991_v42  ;;  %v417_v53 = vor.u32 4788187, %v416_v50  ;;  %vm340_vm6 = vcmp.lt.s32.totalorder %v4094_v20, 0 }
 0x16a   : > { %v4734_v22 = vsel %vm1158_vm7, nan, %v1168_v12  ;;  %v4738_v8 = vsel %vm1158_vm7, nan, %v1992_v49  ;;  %v817_v1 = vshll.u32 %v4727_v32, 30  ;;  %v567_v9 = vshrl.u32 %v3859_v5, %v4685_v18 }
 0x16b   : > { %v3493_v36 = vpack.c.bf16 %v4734_v22, %v4718_v59  ;;  %v418_v25 = vand.u32 2147483647, %v417_v53  ;;  %v425_v47 = vsel %vm340_vm6, %v424_v41, %v4633_v46  ;;  %v563_v63 = vshll.u32 %v3858_v61, %v4231_v56 }
 0x16c   : > { %v4751_v23 = vsub.s32 %v814_v57, %v817_v1  ;;  %v573_v51 = vshrl.u32 %v3861_v16, %v4685_v18  ;;  %v420_v45 = vcvt.s32.f32 %v413_v0  ;;  %v566_v30 = vshll.u32 %v3857_v54, %v4231_v56 }
 0x16d   : > { %3494 = vmatprep.subr.bf16.mxu1 %v3493_v36  ;;  %v570_v2 = vshrl.u32 %v3860_v10, %v4685_v18  ;;  %v576_v28 = vshrl.u32 %v3862_v27, %v4685_v18  ;;  %v553_v57 = vand.u32 8388607, %v546_v44  ;;  %v565_v35 = vor.u32 %v564_v3, %v563_v63 }
 0x16e   : > { %v820_v46 = vsub.s32 0, %v4751_v23  ;;  %v572_v37 = vshll.u32 %v3860_v10, %v4231_v56  ;;  %v421_v41 = vmul.f32 %v420_v45, %v418_v25  ;;  %v568_v29 = vor.u32 %v567_v9, %v566_v30 }
 0x16f   : > { %v569_v62 = vshll.u32 %v3859_v5, %v4231_v56  ;;  %v575_v42 = vshll.u32 %v3861_v16, %v4231_v56  ;;  %v4774_v58 = vand.u32 31, %v4690_v33  ;;  %vm4778_vm1 = vcmp.le.f32.partialorder %v338_v34, 0.7853982 }
 0x170   : > { %v3413_v55 = vmin.u32 %v820_v46, %v4751_v23  ;;  %v574_v50 = vor.u32 %v573_v51, %v572_v37  ;;  %v4784_v49 = vsel %vm4778_vm1, 0, %v425_v47  ;;  %v562_v56 = vshrl.u32 %v3858_v61, %v4685_v18 }
 0x171   : > { %v571_v19 = vor.u32 %v570_v2, %v569_v62  ;;  %v577_v12 = vor.u32 %v576_v28, %v575_v42  ;;  %vm578_vm14 = vcmp.lt.s32.totalorder %v4682_v48, 1  ;;  %v422_v53 = vxor.u32 2147483648, %v421_v41 }
 0x172   : > { %v822_v0 = vclz %v3413_v55  ;;  %v554_v1 = vor.u32 8388608, %v553_v57  ;;  %vm581_vm2 = vcmp.lt.s32.totalorder %v4682_v48, 4  ;;  %v586_v34 = vsel %vm578_vm14, %v565_v35, %v568_v29 }
 0x173   : > { %vm579_vm3 = vcmp.lt.s32.totalorder %v4682_v48, 2  ;;  %vm580_vm4 = vcmp.lt.s32.totalorder %v4682_v48, 3  ;;  %v587_v36 = vsel %vm581_vm2, %v574_v50, 920167782  ;;  %v583_v25 = vsel %vm581_vm2, %v571_v19, 2102212464 }
 0x174   : > { %v3414_v3 = vadd.s32 4294967294, %v822_v0  ;;  %v588_v9 = vsel %vm580_vm4, %v571_v19, %v587_v36  ;;  %v590_v18 = vsel %vm578_vm14, %v568_v29, %v571_v19  ;;  %v591_v47 = vsel %vm581_vm2, %v577_v12, 1326507024 }
 0x175   : > { %v810_v63 = vadd.s32 %v4677_v26, %v4693_v31  ;;  %v589_v51 = vsel %vm579_vm3, %v586_v34, %v588_v9  ;;  %v592_v45 = vsel %vm580_vm4, %v574_v50, %v591_v47  ;;  %v423_v30 = vsel %vm340_vm6, %v422_v53, %v421_v41 }
 0x176   : > { %vm3415_vm5 = vcmp.lt.s32.totalorder %v3414_v3, 0  ;;  %v593_v28 = vsel %vm579_vm3, %v590_v18, %v592_v45  ;;  %v594_v46 = vshll.u32 %v554_v1, 8  ;;  %v582_v26 = vsel %vm578_vm14, %v562_v56, %v565_v35 }
 0x177   : > { %v825_v2 = vsel %vm3415_vm5, 0, %v3414_v3  ;;  %v584_v31 = vsel %vm580_vm4, %v568_v29, %v583_v25  ;;  %v840_v0 = vsub.s32 4, %v4727_v32  ;;  %v4822_v53 = vshrl.u32 %v4690_v33, 5 }
 0x178   : > { %v826_v57 = vsub.s32 32, %v825_v2  ;;  %v830_v37 = vsub.s32 4294967266, %v825_v2  ;;  %v4812_v62 = vmul.u32.u64.low %v594_v46, %v593_v28  ;;  %v4813_v42 = vmul.u32.u64.high %v594_v46, %v593_v28, %v4812_v62 }
 0x179   : > { %v4815_v55 = vmul.u32.u64.low %v594_v46, %v589_v51  ;;  %v4816_v50 = vmul.u32.u64.high %v594_v46, %v589_v51, %v4815_v55  ;;  %v827_v41 = vshll.u32 %v4751_v23, %v825_v2  ;;  %v4825_v35 = vsub.s32 32, %v4774_v58 }
 0x17a   : > { %v828_v19 = vshrl.u32 %v810_v63, %v826_v57  ;;  %v831_v12 = vadd.s32 127, %v830_v37  ;;  %v585_v29 = vsel %vm579_vm3, %v582_v26, %v584_v31  ;;  %v426_v56 = vsel %vm4778_vm1, %v4094_v20, %v423_v30 }
 0x17b   : > { %vm756_vm7 = vcmp.lt.s32.totalorder %v4108_v39, 0  ;;  %v431_v34 = vadd.s32 3, %v4784_v49  ;;  %vm4836_vm8 = vcmp.le.f32.partialorder %v754_v4, 0.7853982  ;;  %vm603_vm9 = vc.u32 %v4813_v42, %v4815_v55 }
 0x17c   : > { %v829_v23 = vor.u32 %v828_v19, %v827_v41  ;;  %v832_v1 = vshll.u32 %v831_v12, 23  ;;  %v604_v48 = vadd.s32 1, %v4816_v50  ;;  %v841_v38 = vsel %vm756_vm7, %v840_v0, %v4727_v32 }
 0x17d   : > { %v601_v36 = vmul.u32 %v594_v46, %v585_v29  ;;  %v962_v25 = vand.u32 2147483647, %v4111_v40  ;;  %3696 = vcosq.f32 %v426_v56  ;;  %v980_v4 = vshrl.u32 %v3857_v54, %v4825_v35 }
 0x17e   : > { %v833_v3 = vor.u32 4788187, %v832_v1  ;;  %v605_v9 = vsel %vm603_vm9, %v604_v48, %v4816_v50  ;;  %v983_v18 = vshrl.u32 %v3859_v5, %v4825_v35  ;;  %3698 = vsinq.f32 %v426_v56 }
 0x17f   : > { %v836_v63 = vcvt.s32.f32 %v829_v23  ;;  %v606_v51 = vadd.s32 %v605_v9, %v601_v36  ;;  %v4852_v45 = vand.u32 3, %v431_v34  ;;  %v843_v32 = vsel %vm4836_vm8, 0, %v841_v38 }
 0x180   : > { %v834_v47 = vand.u32 2147483647, %v833_v3  ;;  %v979_v30 = vshll.u32 %v3858_v61, %v4774_v58  ;;  %v982_v2 = vshll.u32 %v3857_v54, %v4774_v58  ;;  %v969_v57 = vand.u32 8388607, %v962_v25 }
 0x181   : > { %v607_v46 = vadd.s32 536870912, %v606_v51  ;;  %v986_v37 = vshrl.u32 %v3860_v10, %v4825_v35  ;;  %v988_v62 = vshll.u32 %v3860_v10, %v4774_v58  ;;  %v989_v50 = vshrl.u32 %v3861_v16, %v4825_v35 }
 0x182   : > { %v837_v28 = vmul.f32 %v836_v63, %v834_v47  ;;  %v981_v26 = vor.u32 %v980_v4, %v979_v30  ;;  %v984_v31 = vor.u32 %v983_v18, %v982_v2  ;;  %v985_v54 = vshll.u32 %v3859_v5, %v4774_v58 }
 0x183   : > { %v4868_v19 = vshrl.u32 %v607_v46, 30  ;;  %v992_v12 = vshrl.u32 %v3862_v27, %v4825_v35  ;;  %v4875_v0 = vand.u32 3, %v4784_v49  ;;  %v990_v29 = vor.u32 %v989_v50, %v988_v62 }
 0x184   : > { %v838_v41 = vxor.u32 2147483648, %v837_v28  ;;  %v991_v56 = vshll.u32 %v3861_v16, %v4774_v58  ;;  %v847_v23 = vadd.s32 3, %v843_v32  ;;  %v987_v34 = vor.u32 %v986_v37, %v985_v54 }
 0x185   : > { %v609_v1 = vshll.u32 %v4868_v19, 30  ;;  %v970_v48 = vor.u32 8388608, %v969_v57  ;;  %vm994_vm10 = vcmp.lt.s32.totalorder %v4822_v53, 1  ;;  %vm434_vm11 = vcmp.eq.s32.totalorder %v4852_v45, 0 }
 0x186   : > { %v839_v10 = vsel %vm756_vm7, %v838_v41, %v837_v28  ;;  %v993_v27 = vor.u32 %v992_v12, %v991_v56  ;;  %vm437_vm12 = vcmp.eq.s32.totalorder %v4852_v45, 2  ;;  %vm997_vm13 = vcmp.lt.s32.totalorder %v4822_v53, 4 }
 0x187   : > { %v842_v5 = vsel %vm4836_vm8, %v4108_v39, %v839_v10  ;;  %v4888_v16 = vsub.s32 %v606_v51, %v609_v1  ;;  %v1002_v58 = vsel %vm994_vm10, %v981_v26, %v984_v31  ;;  %v4893_v49 = vpop.eup %3696  ;;  %v4895_v33 = vand.u32 3, %v843_v32 }
 0x188   : > { %3700 = vcosq.f32 %v842_v5  ;;  %vm996_vm15 = vcmp.lt.s32.totalorder %v4822_v53, 3  ;;  %v1003_v3 = vsel %vm997_vm13, %v990_v29, 920167782  ;;  %v3699_v38 = vpop.eup %3698  ;;  %v978_v9 = vshrl.u32 %v3858_v61, %v4825_v35 }
 0x189   : > { %3702 = vsinq.f32 %v842_v5  ;;  %v612_v36 = vsub.s32 0, %v4888_v16  ;;  %vm995_vm0 = vcmp.lt.s32.totalorder %v4822_v53, 2  ;;  %v1004_v4 = vsel %vm996_vm15, %v987_v34, %v1003_v3 }
 0x18a   : > { %vm433_vm6 = vcmp.lt.s32.totalorder %v4852_v45, 2  ;;  %v1005_v18 = vsel %vm995_vm0, %v1002_v58, %v1004_v4  ;;  %v1006_v47 = vsel %vm994_vm10, %v984_v31, %v987_v34  ;;  %v1007_v63 = vsel %vm997_vm13, %v993_v27, 1326507024 }
 0x18b   : > { %v1010_v51 = vshll.u32 %v970_v48, 8  ;;  %v438_v32 = vxor.u32 2147483648, %v4893_v49  ;;  %v3405_v61 = vmin.u32 %v612_v36, %v4888_v16  ;;  %v999_v35 = vsel %vm997_vm13, %v987_v34, 2102212464 }
 0x18c   : > { %v1008_v30 = vsel %vm996_vm15, %v990_v29, %v1007_v63  ;;  %v435_v2 = vxor.u32 2147483648, %v3699_v38  ;;  %v848_v37 = vand.u32 3, %v847_v23  ;;  %vm1265_vm1 = vcmp.eq.s32.totalorder %v4875_v0, 0 }
 0x18d   : > { %v1009_v28 = vsel %vm995_vm0, %v1006_v47, %v1008_v30  ;;  %v4921_v46 = vmul.u32.u64.low %v1010_v51, %v1005_v18  ;;  %v4922_v57 = vmul.u32.u64.high %v1010_v51, %v1005_v18, %v4921_v46  ;;  %vm1268_vm14 = vcmp.eq.s32.totalorder %v4875_v0, 2 }
 0x18e   : > { %v614_v62 = vclz %v3405_v61  ;;  %vm430_vm2 = vweird.f32 %v4094_v20  ;;  %vm846_vm3 = vweird.f32 %v4108_v39  ;;  %v998_v50 = vsel %vm994_vm10, %v978_v9, %v981_v26 }
 0x18f   : > { %v1000_v41 = vsel %vm996_vm15, %v984_v31, %v999_v35  ;;  %v4933_v54 = vmul.u32.u64.low %v1010_v51, %v1009_v28  ;;  %v4934_v12 = vmul.u32.u64.high %v1010_v51, %v1009_v28, %v4933_v54  ;;  %vm1676_vm4 = vcmp.lt.s32.totalorder %v4895_v33, 2 }
 0x190   : > { %vm1677_vm5 = vcmp.eq.s32.totalorder %v4895_v33, 0  ;;  %v3406_v29 = vadd.s32 4294967294, %v614_v62  ;;  %v436_v56 = vsel %vm434_vm11, %v4893_v49, %v435_v2  ;;  %v439_v10 = vsel %vm437_vm12, %v438_v32, %v3699_v38 }
 0x191   : > { %vm1680_vm7 = vcmp.eq.s32.totalorder %v4895_v33, 2  ;;  %v1020_v26 = vadd.s32 1, %v4922_v57  ;;  %v3863_v31 = vmov 0.0   ;;  %vm849_vm8 = vcmp.lt.s32.totalorder %v848_v37, 2 }
 0x192   : > { %2071 = vmatprep.mubr.f32.mxu0 %v3863_v31  ;;  %2160 = vmatprep.mubr.f32.mxu1 %v3863_v31  ;;  %v3701_v23 = vpop.eup %3700  ;;  %vm850_vm9 = vcmp.eq.s32.totalorder %v848_v37, 0  ;;  %vm3407_vm10 = vcmp.lt.s32.totalorder %v3406_v29, 0  ;;  %v1001_v1 = vsel %vm995_vm0, %v998_v50, %v1000_v41  ;;  %vm853_vm11 = vcmp.eq.s32.totalorder %v848_v37, 2 }
 0x193   : > { %v3703_v34 = vpop.eup %3702  ;;  %v854_v5 = vxor.u32 2147483648, %v3701_v23  ;;  %v617_v48 = vsel %vm3407_vm10, 0, %v3406_v29  ;;  %vm1019_vm12 = vc.u32 %v4934_v12, %v4921_v46  ;;  %v440_v27 = vsel %vm433_vm6, %v436_v56, %v439_v10 }
 0x194   : > { %v851_v58 = vxor.u32 2147483648, %v3703_v34  ;;  %v1270_v3 = vsel %vm1268_vm14, %v438_v32, %v3699_v38  ;;  %v622_v36 = vsub.s32 4294967266, %v617_v48  ;;  %v1017_v4 = vmul.u32 %v1010_v51, %v1001_v1 }
 0x195   : > { %v855_v9 = vsel %vm853_vm11, %v854_v5, %v3703_v34  ;;  %v1682_v53 = vsel %vm1680_vm7, %v854_v5, %v3703_v34  ;;  %v1021_v18 = vsel %vm1019_vm12, %v1020_v26, %v4922_v57  ;;  %v1267_v63 = vsel %vm1265_vm1, %v4893_v49, %v435_v2  ;;  %v4996_v26 = vld [vmem:[%s5581_s2] sm:$0xff]  ;;  %v5004_v34 = vld [vmem:[%s5581_s2 + $0x8] sm:$0xff] }
 0x196   : > { %v852_v47 = vsel %vm850_vm9, %v3701_v23, %v851_v58  ;;  %v1679_v45 = vsel %vm1677_vm5, %v3701_v23, %v851_v58  ;;  %v623_v61 = vadd.s32 127, %v622_v36  ;;  %v618_v35 = vsub.s32 32, %v617_v48  ;;  %v5012_v58 = vld [vmem:[%s5581_s2 + $0x10] sm:$0xff] }
 0x197   : > { %v856_v38 = vsel %vm849_vm8, %v852_v47, %v855_v9  ;;  %v1683_v32 = vsel %vm1676_vm4, %v1679_v45, %v1682_v53  ;;  %v1022_v30 = vadd.s32 %v1021_v18, %v1017_v4  ;;  %v4969_v51 = vsel %vm430_vm2, nan, %v440_v27  ;;  %v5022_v18 = vld [vmem:[%s5581_s2 + $0x18] sm:$0xff] }
 0x198   : > { %v4973_v28 = vsel %vm846_vm3, nan, %v856_v38  ;;  %vm1264_vm13 = vcmp.lt.s32.totalorder %v4875_v0, 2  ;;  %v602_v49 = vadd.s32 %v4815_v55, %v4813_v42  ;;  %v624_v57 = vshll.u32 %v623_v61, 23 }
 0x199   : > { %v1271_v2 = vsel %vm1264_vm13, %v1267_v63, %v1270_v3  ;;  %v3487_v33 = vpack.c.bf16 %v4973_v28, %v4969_v51  ;;  %v1023_v37 = vadd.s32 536870912, %v1022_v30  ;;  %v4982_v62 = vsel %vm846_vm3, nan, %v1683_v32 }
 0x19a   : > { %v3489_v50 = vpack.c.bf16 %v4503_v43, %v4437_v60  ;;  %v620_v41 = vshrl.u32 %v602_v49, %v618_v35  ;;  %v4988_v0 = vsel %vm430_vm2, nan, %v1271_v2  ;;  %v619_v42 = vshll.u32 %v4888_v16, %v617_v48 }
 0x19b   : > { %3488 = vmatpush1.bf16.msra.mxu0 %v3487_v33  ;;  %v1024_v54 = vshrl.u32 %v1023_v37, 30  ;;  %v625_v55 = vor.u32 4788187, %v624_v57  ;;  %v3491_v39 = vpack.c.bf16 %v4982_v62, %v4988_v0  ;;  %vm1994_vm15 = vcmask 261120  }
 0x19c   : > { %3490 = vmatprep.subr.bf16.mxu0 %v3489_v50  ;;  %v621_v56 = vor.u32 %v620_v41, %v619_v42  ;;  %v1018_v9 = vadd.s32 %v4921_v46, %v4934_v12  ;;  %vm548_vm6 = vcmp.lt.s32.totalorder %v4099_v24, 0  ;;  %vm5031_vm1 = vcmp.le.f32.partialorder %v546_v44, 0.7853982 }
 0x19d   : > { %v1025_v29 = vshll.u32 %v1024_v54, 30  ;;  %v626_v20 = vand.u32 2147483647, %v625_v55  ;;  %v1048_v44 = vsub.s32 4, %v1024_v54  ;;  %vm964_vm14 = vcmp.lt.s32.totalorder %v4111_v40, 0 }
 0x19e   : > { %v628_v16 = vcvt.s32.f32 %v621_v56  ;;  %vm963_vm2 = vcmp.le.f32.partialorder %v962_v25, 0.7853982 }
 0x19f   : > { %v1026_v10 = vsub.s32 %v1022_v30, %v1025_v29  ;;  %3492 = vmatpush1.bf16.msra.mxu0 %v3491_v39  ;;  %v632_v30 = vsub.s32 4, %v4868_v19  ;;  %v1049_v42 = vsel %vm964_vm14, %v1048_v44, %v1024_v54 }
 0x1a0   : > { %v629_v5 = vmul.f32 %v628_v16, %v626_v20  ;;  %v1051_v39 = vsel %vm963_vm2, 0, %v1049_v42 }
 0x1a1   : > { %v1028_v23 = vsub.s32 0, %v1026_v10  ;;  %v633_v57 = vsel %vm548_vm6, %v632_v30, %v4868_v19  ;;  %v1055_v19 = vadd.s32 3, %v1051_v39 }
 0x1a2   : > { %3460 = vmatmul.mubr.msk.f32.vlgmr.msra.gmra.mrb[0].mxu0 %vm1994_vm15, %v4996_v26  ;;  %v630_v3 = vxor.u32 2147483648, %v629_v5  ;;  %v635_v50 = vsel %vm5031_vm1, 0, %v633_v57 }
 0x1a3   : > { %v3421_v1 = vmin.u32 %v1028_v23, %v1026_v10  ;;  %2077 = vmatprep.mubr.f32.mxu0 %v3863_v31  ;;  %v639_v29 = vadd.s32 3, %v635_v50 }
 0x1a4   : > { %v631_v47 = vsel %vm548_vm6, %v630_v3, %v629_v5  ;;  %v1881_v5 = vand.u32 3, %v1051_v39  ;;  %vm638_vm6 = vweird.f32 %v4099_v24 }
 0x1a5   : > { %v1030_v48 = vclz %v3421_v1  ;;  %v634_v32 = vsel %vm5031_vm1, %v4099_v24, %v631_v47  ;;  %v640_v20 = vand.u32 3, %v639_v29  ;;  %v1469_v1 = vand.u32 3, %v635_v50 }
 0x1a6   : > { %3461 = vmatmul.mubr.msk.f32.gmra.mrb[2].mxu0 %vm1994_vm15, %v5004_v34  ;;  %3704 = vcosq.f32 %v634_v32  ;;  %vm1882_vm9 = vcmp.lt.s32.totalorder %v1881_v5, 2  ;;  %vm1883_vm10 = vcmp.eq.s32.totalorder %v1881_v5, 0  ;;  %vm1886_vm13 = vcmp.eq.s32.totalorder %v1881_v5, 2 }
 0x1a7   : > { %v3422_v27 = vadd.s32 4294967294, %v1030_v48  ;;  %2083 = vmatprep.mubr.f32.mxu0 %v3863_v31  ;;  %3706 = vsinq.f32 %v634_v32  ;;  %v1056_v48 = vand.u32 3, %v1055_v19  ;;  %vm642_vm3 = vcmp.eq.s32.totalorder %v640_v20, 0 }
 0x1a8   : > { %vm645_vm4 = vcmp.eq.s32.totalorder %v640_v20, 2  ;;  %vm641_vm5 = vcmp.lt.s32.totalorder %v640_v20, 2  ;;  %vm1471_vm7 = vcmp.eq.s32.totalorder %v1469_v1, 0  ;;  %vm1474_vm8 = vcmp.eq.s32.totalorder %v1469_v1, 2 }
 0x1a9   : > { %vm3423_vm0 = vcmp.lt.s32.totalorder %v3422_v27, 0  ;;  %vm1057_vm11 = vcmp.lt.s32.totalorder %v1056_v48, 2  ;;  %vm1061_vm12 = vcmp.eq.s32.totalorder %v1056_v48, 2  ;;  %vm1054_vm1 = vweird.f32 %v4111_v40 }
 0x1aa   : > { %v1033_v36 = vsel %vm3423_vm0, 0, %v3422_v27  ;;  %3462 = vmatmul.mubr.msk.f32.gmra.mrb[4].mxu0 %vm1994_vm15, %v5012_v58  ;;  %vm1058_vm0 = vcmp.eq.s32.totalorder %v1056_v48, 0 }
 0x1ab   : > { %v1034_v53 = vsub.s32 32, %v1033_v36  ;;  %v1038_v4 = vsub.s32 4294967266, %v1033_v36  ;;  %2089 = vmatprep.mubr.f32.mxu0 %v3863_v31  ;;  %v1035_v63 = vshll.u32 %v1026_v10, %v1033_v36 }
 0x1ad   : > { %v1036_v45 = vshrl.u32 %v1018_v9, %v1034_v53  ;;  %v1039_v61 = vadd.s32 127, %v1038_v4 }
 0x1ae   : > { %3463 = vmatmul.mubr.msk.f32.gmra.mrb[6].mxu0 %vm1994_vm15, %v5022_v18 }
 0x1af   : > { %v1037_v12 = vor.u32 %v1036_v45, %v1035_v63  ;;  %v1040_v38 = vshll.u32 %v1039_v61, 23  ;;  %2621 = vmatprep.mubr.f32.mxu0 %v3863_v31 }
 0x1b0   : > { %v3705_v56 = vpop.eup %3704 }
 0x1b1   : > { %v1041_v35 = vor.u32 4788187, %v1040_v38  ;;  %v1044_v2 = vcvt.s32.f32 %v1037_v12  ;;  %v3707_v10 = vpop.eup %3706  ;;  %v646_v16 = vxor.u32 2147483648, %v3705_v56 }
 0x1b2   : > { %v643_v23 = vxor.u32 2147483648, %v3707_v10 }
 0x1b3   : > { %v1042_v49 = vand.u32 2147483647, %v1041_v35  ;;  %v647_v27 = vsel %vm645_vm4, %v646_v16, %v3707_v10  ;;  %v1476_v61 = vsel %vm1474_vm8, %v646_v16, %v3707_v10 }
 0x1b4   : > { %v644_v54 = vsel %vm642_vm3, %v3705_v56, %v643_v23  ;;  %v1473_v45 = vsel %vm1471_vm7, %v3705_v56, %v643_v23  ;;  %v5098_v23 = vpop.permute.xlu0 %2213 }
 0x1b5   : > { %v1045_v33 = vmul.f32 %v1044_v2, %v1042_v49  ;;  %v648_v53 = vsel %vm641_vm5, %v644_v54, %v647_v27 }
 0x1b6   : > { %v5052_v32 = vsel %vm638_vm6, nan, %v648_v53 }
 0x1b7   : > { %v1046_v37 = vxor.u32 2147483648, %v1045_v33 }
 0x1b9   : > { %v1047_v41 = vsel %vm964_vm14, %v1046_v37, %v1045_v33  ;;  %vm1470_vm14 = vcmp.lt.s32.totalorder %v1469_v1, 2  ;;  %v3497_v33 = vpack.c.bf16 %v4738_v8, %v4622_v11 }
 0x1ba   : > { %v1050_v55 = vsel %vm963_vm2, %v4111_v40, %v1047_v41  ;;  %v1477_v30 = vsel %vm1470_vm14, %v1473_v45, %v1476_v61 }
 0x1bb   : > { %3708 = vcosq.f32 %v1050_v55  ;;  %v5062_v24 = vsel %vm638_vm6, nan, %v1477_v30 }
 0x1bc   : > { %3710 = vsinq.f32 %v1050_v55 }
 0x1c5   : > { %v3709_v25 = vpop.eup %3708 }
 0x1c6   : > { %v3711_v3 = vpop.eup %3710  ;;  %v1062_v36 = vxor.u32 2147483648, %v3709_v25 }
 0x1c7   : > { %v1059_v9 = vxor.u32 2147483648, %v3711_v3 }
 0x1c8   : > { %v1063_v4 = vsel %vm1061_vm12, %v1062_v36, %v3711_v3  ;;  %v1888_v47 = vsel %vm1886_vm13, %v1062_v36, %v3711_v3 }
 0x1c9   : > { %v1060_v63 = vsel %vm1058_vm0, %v3709_v25, %v1059_v9  ;;  %v1885_v46 = vsel %vm1883_vm10, %v3709_v25, %v1059_v9 }
 0x1ca   : > { %v1064_v12 = vsel %vm1057_vm11, %v1060_v63, %v1063_v4  ;;  %v1889_v38 = vsel %vm1882_vm9, %v1885_v46, %v1888_v47 }
 0x1cb   : > { %v5054_v35 = vsel %vm1054_vm1, nan, %v1064_v12  ;;  %v5058_v2 = vsel %vm1054_vm1, nan, %v1889_v38 }
 0x1cc   : > { %v3495_v49 = vpack.c.bf16 %v5054_v35, %v5052_v32  ;;  %v3499_v40 = vpack.c.bf16 %v5058_v2, %v5062_v24 }
 0x1ce   : > { %3496 = vmatpush1.bf16.msra.mxu1 %v3495_v49 }
 0x1cf   : > { %3498 = vmatprep.subr.bf16.mxu1 %v3497_v33 }
 0x1d2   : > { %3500 = vmatpush1.bf16.msra.mxu1 %v3499_v40 }
 0x1d5   : > { %3464 = vmatmul.mubr.msk.f32.vlgmr.msra.gmra.mrb[0].mxu1 %vm1994_vm15, %v4996_v26 }
 0x1d6   : > { %2166 = vmatprep.mubr.f32.mxu1 %v3863_v31 }
 0x1d7   : > { %v5078_v44 = vpop.permute.xlu1 %2203 }
 0x1d9   : > { %3465 = vmatmul.mubr.msk.f32.gmra.mrb[2].mxu1 %vm1994_vm15, %v5004_v34 }
 0x1da   : > { %2172 = vmatprep.mubr.f32.mxu1 %v3863_v31 }
 0x1dd   : > { %3466 = vmatmul.mubr.msk.f32.gmra.mrb[4].mxu1 %vm1994_vm15, %v5012_v58 }
 0x1de   : > { %2178 = vmatprep.mubr.f32.mxu1 %v3863_v31 }
 0x1df   : > { %v5084_v58 = vpop.permute.xlu1 %2208 }
 0x1e1   : > { %3467 = vmatmul.mubr.msk.f32.gmra.mrb[6].mxu1 %vm1994_vm15, %v5022_v18 }
 0x1e2   : > { %2710 = vmatprep.mubr.f32.mxu1 %v3863_v31 }
 0x1e3   : > { %v5112_v4 = vpop.permute.xlu1 %2218 }
 0x275   : > { %v2073_v26 = vpop.f32.mrb[0].mxu0 }
 0x276   : > { %vm2185_vm2 = vcmp.ge.f32.partialorder %v2073_v26, 0.0  ;;  %v2221_v57 = vmul.f32 %v5078_v44, %v2073_v26  ;;  %v2075_v37 = vpop.f32.mrb[1].mxu0 }
 0x277   : > { %vm2186_vm3 = vcmp.ge.f32.partialorder %v2075_v37, 0.0  ;;  %v2222_v34 = vmul.f32 %v5078_v44, %v2075_v37 }
 0x278   : > { %v5082_v50 = vsel %vm2185_vm2, %v2073_v26, %v2221_v57 }
 0x279   : > { %v2269_v41 = vmul.f32 %v5082_v50, %v5082_v50  ;;  %v5088_v18 = vsel %vm2186_vm3, %v2075_v37, %v2222_v34  ;;  %v2079_v42 = vpop.f32.mrb[2].mxu0 }
 0x27a   : > { %v2253_v55 = vadd.f32 %v5088_v18, %v5082_v50  ;;  %v2270_v29 = vmul.f32 %v5088_v18, %v5088_v18  ;;  %vm2189_vm4 = vcmp.ge.f32.partialorder %v2079_v42, 0.0  ;;  %v2225_v39 = vmul.f32 %v5084_v58, %v2079_v42  ;;  %v2081_v56 = vpop.f32.mrb[3].mxu0 }
 0x27b   : > { %vm2190_vm5 = vcmp.ge.f32.partialorder %v2081_v56, 0.0  ;;  %v2226_v10 = vmul.f32 %v5084_v58, %v2081_v56 }
 0x27c   : > { %v2277_v19 = vadd.f32 %v2270_v29, %v2269_v41  ;;  %v5096_v20 = vsel %vm2189_vm4, %v2079_v42, %v2225_v39 }
 0x27d   : > { %v2254_v16 = vadd.f32 %v2253_v55, %v5096_v20  ;;  %v2271_v1 = vmul.f32 %v5096_v20, %v5096_v20  ;;  %v5103_v5 = vsel %vm2190_vm5, %v2081_v56, %v2226_v10  ;;  %v2085_v48 = vpop.f32.mrb[4].mxu0 }
 0x27e   : > { %v2272_v25 = vmul.f32 %v5103_v5, %v5103_v5  ;;  %vm2193_vm7 = vcmp.ge.f32.partialorder %v2085_v48, 0.0  ;;  %v2229_v54 = vmul.f32 %v5098_v23, %v2085_v48  ;;  %v2087_v27 = vpop.f32.mrb[5].mxu0 }
 0x27f   : > { %v2278_v3 = vadd.f32 %v2277_v19, %v2271_v1  ;;  %v2255_v36 = vadd.f32 %v2254_v16, %v5103_v5  ;;  %vm2194_vm8 = vcmp.ge.f32.partialorder %v2087_v27, 0.0  ;;  %v2230_v9 = vmul.f32 %v5098_v23, %v2087_v27 }
 0x280   : > { %v5110_v53 = vsel %vm2193_vm7, %v2085_v48, %v2229_v54 }
 0x281   : > { %v2279_v47 = vadd.f32 %v2278_v3, %v2272_v25  ;;  %v2256_v63 = vadd.f32 %v2255_v36, %v5110_v53  ;;  %v2273_v45 = vmul.f32 %v5110_v53, %v5110_v53  ;;  %v5117_v61 = vsel %vm2194_vm8, %v2087_v27, %v2230_v9  ;;  %v2091_v46 = vpop.f32.mrb[6].mxu0 }
 0x282   : > { %v2274_v12 = vmul.f32 %v5117_v61, %v5117_v61  ;;  %vm2197_vm9 = vcmp.ge.f32.partialorder %v2091_v46, 0.0  ;;  %v2233_v38 = vmul.f32 %v5112_v4, %v2091_v46  ;;  %v2093_v30 = vpop.f32.mrb[7].mxu0 }
 0x283   : > { %vm2198_vm10 = vcmp.ge.f32.partialorder %v2093_v30, 0.0  ;;  %v2234_v49 = vmul.f32 %v5112_v4, %v2093_v30  ;;  %v2257_v33 = vadd.f32 %v2256_v63, %v5117_v61  ;;  %v2280_v40 = vadd.f32 %v2279_v47, %v2273_v45 }
 0x284   : > { %v5124_v26 = vsel %vm2197_vm9, %v2091_v46, %v2233_v38 }
 0x285   : > { %v5126_v57 = vsel %vm2198_vm10, %v2093_v30, %v2234_v49  ;;  %v2258_v37 = vadd.f32 %v2257_v33, %v5124_v26  ;;  %v2275_v34 = vmul.f32 %v5124_v26, %v5124_v26  ;;  %v2281_v41 = vadd.f32 %v2280_v40, %v2274_v12 }
 0x286   : > { %v2276_v42 = vmul.f32 %v5126_v57, %v5126_v57 }
 0x287   : > { %v2259_v55 = vadd.f32 %v2258_v37, %v5126_v57  ;;  %v2282_v29 = vadd.f32 %v2281_v41, %v2275_v34 }
 0x289   : > { %2260 = vadd.xlane.f32.xlu0 %v2259_v55  ;;  %v2283_v39 = vadd.f32 %v2282_v29, %v2276_v42 }
 0x28b   : > { %2284 = vadd.xlane.f32.xlu1 %v2283_v39 }
 0x2a8   : > { %v2162_v56 = vpop.f32.mrb[0].mxu1 }
 0x2a9   : > { %vm2187_vm11 = vcmp.ge.f32.partialorder %v2162_v56, 0.0  ;;  %v2223_v10 = vmul.f32 %v5078_v44, %v2162_v56  ;;  %v2164_v19 = vpop.f32.mrb[1].mxu1 }
 0x2aa   : > { %vm2188_vm12 = vcmp.ge.f32.partialorder %v2164_v19, 0.0  ;;  %v2224_v16 = vmul.f32 %v5078_v44, %v2164_v19 }
 0x2ab   : > { %v5136_v1 = vsel %vm2187_vm11, %v2162_v56, %v2223_v10 }
 0x2ac   : > { %v2407_v48 = vmul.f32 %v5136_v1, %v5136_v1  ;;  %v5140_v25 = vsel %vm2188_vm12, %v2164_v19, %v2224_v16  ;;  %v2168_v54 = vpop.f32.mrb[2].mxu1 }
 0x2ad   : > { %v2391_v27 = vadd.f32 %v5140_v25, %v5136_v1  ;;  %v2408_v3 = vmul.f32 %v5140_v25, %v5140_v25  ;;  %vm2191_vm13 = vcmp.ge.f32.partialorder %v2168_v54, 0.0  ;;  %v2227_v36 = vmul.f32 %v5084_v58, %v2168_v54  ;;  %v2170_v9 = vpop.f32.mrb[3].mxu1 }
 0x2ae   : > { %vm2192_vm0 = vcmp.ge.f32.partialorder %v2170_v9, 0.0  ;;  %v2228_v44 = vmul.f32 %v5084_v58, %v2170_v9 }
 0x2af   : > { %v2415_v47 = vadd.f32 %v2408_v3, %v2407_v48  ;;  %v5148_v63 = vsel %vm2191_vm13, %v2168_v54, %v2227_v36 }
 0x2b0   : > { %v2392_v45 = vadd.f32 %v2391_v27, %v5148_v63  ;;  %v2409_v46 = vmul.f32 %v5148_v63, %v5148_v63  ;;  %v5153_v12 = vsel %vm2192_vm0, %v2170_v9, %v2228_v44  ;;  %v2174_v38 = vpop.f32.mrb[4].mxu1 }
 0x2b1   : > { %v2410_v30 = vmul.f32 %v5153_v12, %v5153_v12  ;;  %vm2195_vm6 = vcmp.ge.f32.partialorder %v2174_v38, 0.0  ;;  %v2231_v49 = vmul.f32 %v5098_v23, %v2174_v38  ;;  %v2176_v33 = vpop.f32.mrb[5].mxu1 }
 0x2b2   : > { %v2416_v40 = vadd.f32 %v2415_v47, %v2409_v46  ;;  %v2393_v58 = vadd.f32 %v2392_v45, %v5153_v12  ;;  %vm2196_vm1 = vcmp.ge.f32.partialorder %v2176_v33, 0.0  ;;  %v2232_v37 = vmul.f32 %v5098_v23, %v2176_v33 }
 0x2b3   : > { %v5160_v34 = vsel %vm2195_vm6, %v2174_v38, %v2231_v49 }
 0x2b4   : > { %v2417_v41 = vadd.f32 %v2416_v40, %v2410_v30  ;;  %v2394_v42 = vadd.f32 %v2393_v58, %v5160_v34  ;;  %v2411_v55 = vmul.f32 %v5160_v34, %v5160_v34  ;;  %v5165_v29 = vsel %vm2196_vm1, %v2176_v33, %v2232_v37  ;;  %v2180_v39 = vpop.f32.mrb[6].mxu1 }
 0x2b5   : > { %v2412_v56 = vmul.f32 %v5165_v29, %v5165_v29  ;;  %vm2199_vm14 = vcmp.ge.f32.partialorder %v2180_v39, 0.0  ;;  %v2235_v10 = vmul.f32 %v5112_v4, %v2180_v39  ;;  %v2182_v19 = vpop.f32.mrb[7].mxu1 }
 0x2b6   : > { %vm2200_vm2 = vcmp.ge.f32.partialorder %v2182_v19, 0.0  ;;  %v2236_v23 = vmul.f32 %v5112_v4, %v2182_v19  ;;  %v2395_v16 = vadd.f32 %v2394_v42, %v5165_v29  ;;  %v2418_v48 = vadd.f32 %v2417_v41, %v2411_v55 }
 0x2b7   : > { %v5172_v54 = vsel %vm2199_vm14, %v2180_v39, %v2235_v10 }
 0x2b8   : > { %v5174_v27 = vsel %vm2200_vm2, %v2182_v19, %v2236_v23  ;;  %v2396_v3 = vadd.f32 %v2395_v16, %v5172_v54  ;;  %v2413_v36 = vmul.f32 %v5172_v54, %v5172_v54  ;;  %v2419_v9 = vadd.f32 %v2418_v48, %v2412_v56 }
 0x2b9   : > { %v2414_v47 = vmul.f32 %v5174_v27, %v5174_v27  ;;  %v3864_v19 = vmov 1  }
 0x2ba   : > { %v2397_v44 = vadd.f32 %v2396_v3, %v5174_v27  ;;  %v2420_v45 = vadd.f32 %v2419_v9, %v2413_v36  ;;  %3664 = vset.pattern.permute.xlu0 %v3864_v19  ;;  %3665 = vset.pattern.permute.xlu1 %v3864_v19 }
 0x2bc   : > { %2398 = vadd.xlane.f32.xlu0 %v2397_v44  ;;  %v2421_v4 = vadd.f32 %v2420_v45, %v2414_v47 }
 0x2c0   : > { %2422 = vadd.xlane.f32.xlu0 %v2421_v4 }
 0x316   : > { %v2261_v46 = vpop.xlane.xlu0 %2260 }
 0x317   : > { %v2262_v38 = vrot.slane %v2261_v46, 4 }
 0x318   : > { %v2285_v30 = vpop.xlane.xlu1 %2284 }
 0x319   : > { %v2263_v49 = vadd.f32 %v2262_v38, %v2261_v46  ;;  %v2286_v33 = vrot.slane %v2285_v30, 4 }
 0x31b   : > { %v2264_v40 = vrot.slane %v2263_v49, 2  ;;  %v2287_v58 = vadd.f32 %v2286_v33, %v2285_v30 }
 0x31d   : > { %v2288_v37 = vrot.slane %v2287_v58, 2  ;;  %v2265_v41 = vadd.f32 %v2264_v40, %v2263_v49 }
 0x31f   : > { %v2266_v42 = vrot.slane %v2265_v41, 1  ;;  %v2289_v55 = vadd.f32 %v2288_v37, %v2287_v58  ;;  %v5191_v37 = vld [vmem:[%s5584_s5] sm:$0xff] }
 0x321   : > { %v2267_v39 = vadd.f32 %v2266_v42, %v2265_v41  ;;  %v2290_v56 = vrot.slane %v2289_v55, 1  ;;  %v5197_v42 = vld [vmem:[%s5584_s5 + $0x8] sm:$0xff] }
 0x323   : > { %3565 = vpush %v2267_v39  ;;  %v2291_v10 = vadd.f32 %v2290_v56, %v2289_v55  ;;  %v5206_v56 = vld [vmem:[%s5584_s5 + $0x10] sm:$0xff] }
 0x325   : > { %3567 = vpush %v2291_v10 }
 0x349   : > { %v2399_v23 = vpop.xlane.xlu0 %2398 }
 0x34a   : > { %v2400_v48 = vrot.slane %v2399_v23, 4 }
 0x34c   : > { %v2401_v36 = vadd.f32 %v2400_v48, %v2399_v23  ;;  %v5216_v48 = vld [vmem:[%s5584_s5 + $0x18] sm:$0xff] }
 0x34d   : > { %v2423_v16 = vpop.xlane.xlu0 %2422 }
 0x34e   : > { %v2424_v3 = vrot.slane %v2423_v16, 4  ;;  %v2402_v44 = vrot.slane %v2401_v36, 2 }
 0x350   : > { %v2425_v9 = vadd.f32 %v2424_v3, %v2423_v16  ;;  %v2403_v4 = vadd.f32 %v2402_v44, %v2401_v36 }
 0x352   : > { %v2426_v47 = vrot.slane %v2425_v9, 2  ;;  %v2404_v38 = vrot.slane %v2403_v4, 1 }
 0x354   : > { %s3566_s14 = spop %3565  ;;  %v2427_v46 = vadd.f32 %v2426_v47, %v2425_v9  ;;  %v2405_v33 = vadd.f32 %v2404_v38, %v2403_v4  ;;  %v3866_v47 = vmov 2  }
 0x355   : > { %s5184_s18 = smul.f32 0.00012207031, %s3566_s14 }
 0x356   : > { %s3568_s11 = spop %3567  ;;  %v2428_v30 = vrot.slane %v2427_v46, 1 }
 0x357   : > { %s2299_s30 = smul.f32 %s5184_s18, %s5184_s18  ;;  %v2310_v39 = vstv %s5184_s18 }
 0x358   : > { %s2298_s15 = smul.f32 0.00012207031, %s3568_s11  ;;  %v2429_v40 = vadd.f32 %v2428_v30, %v2427_v46 }
 0x35a   : > { %s2300_s16 = ssub.f32 %s2298_s15, %s2299_s30 }
 0x35c   : > { %s2301_s29 = sadd.f32 1e-05, %s2300_s16 }
 0x35e   : > { %v2302_v45 = vstv %s2301_s29 }
 0x35f   : > { %3712 = vrsqrt.f32 %v2302_v45 }
 0x369   : > { %v3713_v49 = vpop.eup %3712 }
 0x36a   : > { %3569 = vpush %v3713_v49 }
 0x36b   : > { %3571 = vpush %v2405_v33 }
 0x36c   : > { %3573 = vpush %v2429_v40 }
 0x39b   : > { %s3570_s7 = spop %3569 }
 0x39c   : > { %v2305_v58 = vstv %s3570_s7  ;;  %s3572_s12 = spop %3571 }
 0x39d   : > { %v2306_v41 = vmul.f32 %v5191_v37, %v2305_v58  ;;  %v2307_v55 = vmul.f32 %v5197_v42, %v2305_v58  ;;  %s5200_s14 = smul.f32 0.00012207031, %s3572_s12  ;;  %s3574_s11 = spop %3573  ;;  %v2308_v10 = vmul.f32 %v5206_v56, %v2305_v58  ;;  %v2309_v3 = vmul.f32 %v5216_v48, %v2305_v58 }
 0x39e   : > { %s2436_s30 = smul.f32 0.00012207031, %s3574_s11 }
 0x39f   : > { %s2437_s29 = smul.f32 %s5200_s14, %s5200_s14  ;;  %v2312_v23 = vmul.f32 %v2310_v39, %v2307_v55  ;;  %v2311_v16 = vmul.f32 %v2310_v39, %v2306_v41  ;;  %v2313_v36 = vmul.f32 %v2310_v39, %v2308_v10  ;;  %v2314_v44 = vmul.f32 %v2310_v39, %v2309_v3 }
 0x3a1   : > { %s2438_s7 = ssub.f32 %s2436_s30, %s2437_s29  ;;  %2321 = vrot.lane.b32.xlu0 %v2312_v23, %s3865_s19  ;;  %2319 = vrot.lane.b32.xlu1 %v2311_v16, %s3865_s19 }
 0x3a3   : > { %s2439_s27 = sadd.f32 1e-05, %s2438_s7 }
 0x3a5   : > { %v2440_v9 = vstv %s2439_s27  ;;  %2337 = vperm.xlu0 %3664, %v2306_v41   ;;  %2323 = vrot.lane.b32.xlu1 %v2313_v36, %s3865_s19  ;;  %v2448_v41 = vstv %s5200_s14 }
 0x3a6   : > { %3714 = vrsqrt.f32 %v2440_v9 }
 0x3a9   : > { %2325 = vrot.lane.b32.xlu1 %v2314_v44, %s3865_s19  ;;  %3667 = vset.pattern.permute.xlu0 %v3866_v47 }
 0x3ad   : > { %2342 = vperm.xlu1 %3665, %v2307_v55  }
 0x3b0   : > { %v3715_v45 = vpop.eup %3714 }
 0x3b1   : > { %3575 = vpush %v3715_v45  ;;  %2347 = vperm.xlu1 %3665, %v2308_v10  }
 0x3b5   : > { %2352 = vperm.xlu1 %3665, %v2309_v3  }
 0x3b9   : > { %3666 = vset.pattern.permute.xlu1 %v3866_v47 }
 0x3e2   : > { %s3576_s20 = spop %3575 }
 0x3e3   : > { %v2443_v49 = vstv %s3576_s20 }
 0x3e4   : > { %v2444_v40 = vmul.f32 %v5191_v37, %v2443_v49  ;;  %v2445_v39 = vmul.f32 %v5197_v42, %v2443_v49  ;;  %v2446_v10 = vmul.f32 %v5206_v56, %v2443_v49  ;;  %v2447_v3 = vmul.f32 %v5216_v48, %v2443_v49 }
 0x3e6   : > { %v2449_v16 = vmul.f32 %v2448_v41, %v2444_v40  ;;  %v2450_v36 = vmul.f32 %v2448_v41, %v2445_v39  ;;  %v2451_v9 = vmul.f32 %v2448_v41, %v2446_v10  ;;  %v2452_v44 = vmul.f32 %v2448_v41, %v2447_v3 }
 0x413   : > { %v2320_v4 = vpop.permute.xlu1 %2319  ;;  %v2322_v46 = vpop.permute.xlu0 %2321 }
 0x414   : > { %v2331_v38 = vsub.f32 %v5191_v37, %v2320_v4  ;;  %v2332_v30 = vsub.f32 %v5197_v42, %v2322_v46 }
 0x416   : > { %2365 = vperm.xlu1 %3666, %v2331_v38   ;;  %2370 = vperm.xlu0 %3667, %v2332_v30  }
 0x417   : > { %v2324_v33 = vpop.permute.xlu1 %2323 }
 0x418   : > { %v2333_v58 = vsub.f32 %v5206_v56, %v2324_v33 }
 0x41a   : > { %2375 = vperm.xlu0 %3667, %v2333_v58  }
 0x41b   : > { %v2326_v55 = vpop.permute.xlu1 %2325 }
 0x41c   : > { %v2334_v23 = vsub.f32 %v5216_v48, %v2326_v55 }
 0x41e   : > { %2380 = vperm.xlu1 %3666, %v2334_v23   ;;  %2457 = vrot.lane.b32.xlu0 %v2449_v16, %s3865_s19 }
 0x41f   : > { %3668 = vset.pattern.permute.xlu0 %v3864_v19 }
 0x422   : > { %2459 = vrot.lane.b32.xlu1 %v2450_v36, %s3865_s19  ;;  %2461 = vrot.lane.b32.xlu0 %v2451_v9, %s3865_s19 }
 0x423   : > { %3669 = vset.pattern.permute.xlu1 %v3864_v19 }
 0x424   : > { %v2338_v46 = vpop.permute.xlu0 %2337 }
 0x425   : > { %v2355_v30 = vmul.f32 %v2338_v46, %v5082_v50  ;;  %v2356_v49 = vmul.f32 %v2338_v46, %v5088_v18 }
 0x426   : > { %2463 = vrot.lane.b32.xlu1 %v2452_v44, %s3865_s19  ;;  %2475 = vperm.xlu0 %3668, %v2444_v40  }
 0x42a   : > { %2480 = vperm.xlu1 %3669, %v2445_v39   ;;  %3671 = vset.pattern.permute.xlu0 %v3866_v47 }
 0x42c   : > { %v2343_v45 = vpop.permute.xlu1 %2342 }
 0x42d   : > { %v2357_v33 = vmul.f32 %v2343_v45, %v5096_v20  ;;  %v2358_v19 = vmul.f32 %v2343_v45, %v5103_v5 }
 0x42e   : > { %2485 = vperm.xlu1 %3669, %v2446_v10  }
 0x430   : > { %v2348_v4 = vpop.permute.xlu1 %2347 }
 0x431   : > { %v2359_v23 = vmul.f32 %v2348_v4, %v5110_v53  ;;  %v2360_v16 = vmul.f32 %v2348_v4, %v5117_v61 }
 0x432   : > { %2490 = vperm.xlu1 %3669, %v2447_v3  }
 0x434   : > { %v2353_v38 = vpop.permute.xlu1 %2352 }
 0x435   : > { %v2361_v9 = vmul.f32 %v2353_v38, %v5124_v26 }
 0x436   : > { %3670 = vset.pattern.permute.xlu1 %v3866_v47 }
 0x495   : > { %v2366_v58 = vpop.permute.xlu1 %2365  ;;  %v2371_v41 = vpop.permute.xlu0 %2370 }
 0x496   : > { %v5240_v40 = vadd.f32 %v2366_v58, %v2355_v30  ;;  %v5242_v55 = vadd.f32 %v2366_v58, %v2356_v49  ;;  %v5244_v39 = vadd.f32 %v2371_v41, %v2357_v33  ;;  %v5246_v47 = vadd.f32 %v2371_v41, %v2358_v19 }
 0x497   : > { %v3867_v41 = vmov 3  }
 0x498   : > { %v2529_v10 = vadd.f32 %v5240_v40, %v4969_v51  ;;  %v2530_v50 = vadd.f32 %v5242_v55, %v4482_v52  ;;  %v2533_v18 = vadd.f32 %v5244_v39, %v4973_v28  ;;  %v2534_v20 = vadd.f32 %v5246_v47, %v4499_v21 }
 0x499   : > { %v2376_v5 = vpop.permute.xlu0 %2375  ;;  %v2362_v51 = vmul.f32 %v2353_v38, %v5126_v57 }
 0x49a   : > { %v3503_v3 = vpack.c.bf16 %v2533_v18, %v2529_v10  ;;  %v3501_v36 = vpack.c.bf16 %v2534_v20, %v2530_v50  ;;  %v5260_v44 = vadd.f32 %v2376_v5, %v2359_v23  ;;  %v5262_v52 = vadd.f32 %v2376_v5, %v2360_v16  ;;  %v292_v10 = vld [vmem:[%s5582_s3 + $0x10] sm:$0xff]  ;;  %v293_v50 = vld [vmem:[%s5582_s3 + $0x18] sm:$0xff] }
 0x49c   : > { %3502 = vmatprep.subr.bf16.mxu0 %v3501_v36  ;;  %v2537_v61 = vadd.f32 %v5260_v44, %v4988_v0  ;;  %v2538_v26 = vadd.f32 %v5262_v52, %v4437_v60  ;;  %v5281_v60 = vld [vmem:[%s5582_s3] sm:$0xff]  ;;  %v291_v0 = vld [vmem:[%s5582_s3 + $0x8] sm:$0xff] }
 0x49d   : > { %v2381_v28 = vpop.permute.xlu1 %2380  ;;  %3504 = vmatpush1.bf16.msra.mxu0 %v3503_v3  ;;  %v2458_v45 = vpop.permute.xlu0 %2457 }
 0x49e   : > { %v5264_v21 = vadd.f32 %v2381_v28, %v2361_v9  ;;  %v5266_v46 = vadd.f32 %v2381_v28, %v2362_v51  ;;  %v2469_v53 = vsub.f32 %v5191_v37, %v2458_v45 }
 0x4a0   : > { %v2541_v57 = vadd.f32 %v5264_v21, %v4982_v62  ;;  %v2542_v4 = vadd.f32 %v5266_v46, %v4503_v43  ;;  %2503 = vperm.xlu1 %3670, %v2469_v53  }
 0x4a1   : > { %v2460_v38 = vpop.permute.xlu1 %2459  ;;  %v2462_v19 = vpop.permute.xlu0 %2461 }
 0x4a2   : > { %v3507_v30 = vpack.c.bf16 %v2541_v57, %v2537_v61  ;;  %v2470_v49 = vsub.f32 %v5197_v42, %v2460_v38  ;;  %v3505_v33 = vpack.c.bf16 %v2542_v4, %v2538_v26  ;;  %v2471_v43 = vsub.f32 %v5206_v56, %v2462_v19 }
 0x4a4   : > { %2508 = vperm.xlu0 %3671, %v2470_v49   ;;  %3506 = vmatprep.subr.bf16.mxu0 %v3505_v33 }
 0x4a5   : > { %v2464_v58 = vpop.permute.xlu1 %2463  ;;  %3508 = vmatpush1.bf16.msra.mxu0 %v3507_v30  ;;  %v2476_v23 = vpop.permute.xlu0 %2475 }
 0x4a6   : > { %v2472_v62 = vsub.f32 %v5216_v48, %v2464_v58  ;;  %v2493_v3 = vmul.f32 %v2476_v23, %v5136_v1  ;;  %v2494_v36 = vmul.f32 %v2476_v23, %v5140_v25 }
 0x4a8   : > { %3468 = vmatmul.mubr.msk.f32.vlgmr.msra.gmra.mrb[8].mxu0 %vm1994_vm15, %v5281_v60  ;;  %2518 = vperm.xlu1 %3670, %v2472_v62  }
 0x4a9   : > { %2513 = vperm.xlu0 %3671, %v2471_v43   ;;  %2627 = vmatprep.mubr.f32.mxu0 %v3863_v31  ;;  %v2481_v18 = vpop.permute.xlu1 %2480 }
 0x4aa   : > { %v2495_v9 = vmul.f32 %v2481_v18, %v5148_v63  ;;  %v2496_v51 = vmul.f32 %v2481_v18, %v5153_v12 }
 0x4ac   : > { %3469 = vmatmul.mubr.msk.f32.gmra.mrb[10].mxu0 %vm1994_vm15, %v291_v0  ;;  %3673 = vset.pattern.permute.xlu1 %v3867_v41 }
 0x4ad   : > { %2633 = vmatprep.mubr.f32.mxu0 %v3863_v31  ;;  %3672 = vset.pattern.permute.xlu0 %v3867_v41  ;;  %v2486_v20 = vpop.permute.xlu1 %2485 }
 0x4ae   : > { %2752 = vperm.xlu0 %3672, %v5191_v37   ;;  %2756 = vperm.xlu1 %3673, %v5197_v42   ;;  %v2497_v38 = vmul.f32 %v2486_v20, %v5160_v34  ;;  %v2498_v30 = vmul.f32 %v2486_v20, %v5165_v29 }
 0x4b0   : > { %3470 = vmatmul.mubr.msk.f32.gmra.mrb[12].mxu0 %vm1994_vm15, %v292_v10 }
 0x4b1   : > { %2639 = vmatprep.mubr.f32.mxu0 %v3863_v31  ;;  %v2491_v5 = vpop.permute.xlu1 %2490 }
 0x4b2   : > { %2760 = vperm.xlu1 %3673, %v5206_v56   ;;  %2764 = vperm.xlu0 %3672, %v5216_v48   ;;  %v2499_v57 = vmul.f32 %v2491_v5, %v5172_v54  ;;  %v2500_v4 = vmul.f32 %v2491_v5, %v5174_v27 }
 0x4b4   : > { %3471 = vmatmul.mubr.msk.f32.gmra.mrb[14].mxu0 %vm1994_vm15, %v293_v50 }
 0x4b5   : > { %3158 = vmatprep.mubr.f32.mxu0 %v3863_v31 }
 0x51f   : > { %v2504_v16 = vpop.permute.xlu1 %2503 }
 0x520   : > { %v5311_v28 = vadd.f32 %v2504_v16, %v2493_v3  ;;  %v5313_v45 = vadd.f32 %v2504_v16, %v2494_v36 }
 0x522   : > { %v2531_v1 = vadd.f32 %v5311_v28, %v5052_v32  ;;  %v2532_v25 = vadd.f32 %v5313_v45, %v4718_v59 }
 0x523   : > { %v2509_v53 = vpop.permute.xlu0 %2508 }
 0x524   : > { %v5315_v61 = vadd.f32 %v2509_v53, %v2495_v9  ;;  %v5317_v26 = vadd.f32 %v2509_v53, %v2496_v51 }
 0x526   : > { %v2535_v63 = vadd.f32 %v5315_v61, %v5054_v35  ;;  %v2536_v12 = vadd.f32 %v5317_v26, %v4734_v22 }
 0x527   : > { %v2519_v49 = vpop.permute.xlu1 %2518 }
 0x528   : > { %v3511_v54 = vpack.c.bf16 %v2535_v63, %v2531_v1  ;;  %v5331_v33 = vadd.f32 %v2519_v49, %v2499_v57  ;;  %v5333_v27 = vadd.f32 %v2519_v49, %v2500_v4  ;;  %v2514_v32 = vpop.permute.xlu0 %2513  ;;  %v3509_v19 = vpack.c.bf16 %v2536_v12, %v2532_v25 }
 0x529   : > { %v5335_v58 = vadd.f32 %v2514_v32, %v2497_v38  ;;  %v5337_v59 = vadd.f32 %v2514_v32, %v2498_v30 }
 0x52a   : > { %v2543_v35 = vadd.f32 %v5331_v33, %v5058_v2  ;;  %v2544_v22 = vadd.f32 %v5333_v27, %v4738_v8  ;;  %3510 = vmatprep.subr.bf16.mxu1 %v3509_v19 }
 0x52b   : > { %v2539_v34 = vadd.f32 %v5335_v58, %v5062_v24  ;;  %v2540_v29 = vadd.f32 %v5337_v59, %v4622_v11  ;;  %3512 = vmatpush1.bf16.msra.mxu1 %v3511_v54 }
 0x52d   : > { %v3515_v62 = vpack.c.bf16 %v2543_v35, %v2539_v34  ;;  %v3513_v43 = vpack.c.bf16 %v2544_v22, %v2540_v29  ;;  %v5356_v11 = vpop.permute.xlu0 %2752  ;;  %v5358_v2 = vpop.permute.xlu1 %2756 }
 0x52f   : > { %3514 = vmatprep.subr.bf16.mxu1 %v3513_v43 }
 0x530   : > { %3516 = vmatpush1.bf16.msra.mxu1 %v3515_v62 }
 0x531   : > { %v5374_v3 = vpop.permute.xlu1 %2760  ;;  %v5388_v49 = vpop.permute.xlu0 %2764 }
 0x533   : > { %3472 = vmatmul.mubr.msk.f32.vlgmr.msra.gmra.mrb[8].mxu1 %vm1994_vm15, %v5281_v60 }
 0x534   : > { %2716 = vmatprep.mubr.f32.mxu1 %v3863_v31 }
 0x537   : > { %3473 = vmatmul.mubr.msk.f32.gmra.mrb[10].mxu1 %vm1994_vm15, %v291_v0 }
 0x538   : > { %2722 = vmatprep.mubr.f32.mxu1 %v3863_v31 }
 0x53b   : > { %3474 = vmatmul.mubr.msk.f32.gmra.mrb[12].mxu1 %vm1994_vm15, %v292_v10 }
 0x53c   : > { %2728 = vmatprep.mubr.f32.mxu1 %v3863_v31 }
 0x53f   : > { %3475 = vmatmul.mubr.msk.f32.gmra.mrb[14].mxu1 %vm1994_vm15, %v293_v50 }
 0x540   : > { %3229 = vmatprep.mubr.f32.mxu1 %v3863_v31 }
 0x57b   : > { %v2623_v8 = vpop.f32.mrb[8].mxu0 }
 0x57c   : > { %vm2735_vm3 = vcmp.ge.f32.partialorder %v2623_v8, 0.0  ;;  %v2625_v24 = vpop.f32.mrb[9].mxu0  ;;  %v2767_v60 = vmul.f32 %v5356_v11, %v2623_v8 }
 0x57d   : > { %vm2736_vm4 = vcmp.ge.f32.partialorder %v2625_v24, 0.0  ;;  %v2768_v0 = vmul.f32 %v5356_v11, %v2625_v24 }
 0x57e   : > { %v5362_v41 = vsel %vm2735_vm3, %v2623_v8, %v2767_v60 }
 0x57f   : > { %v5364_v10 = vsel %vm2736_vm4, %v2625_v24, %v2768_v0  ;;  %v2815_v50 = vmul.f32 %v5362_v41, %v5362_v41  ;;  %v2629_v31 = vpop.f32.mrb[10].mxu0 }
 0x580   : > { %v2816_v18 = vmul.f32 %v5364_v10, %v5364_v10  ;;  %vm2739_vm5 = vcmp.ge.f32.partialorder %v2629_v31, 0.0  ;;  %v2771_v20 = vmul.f32 %v5358_v2, %v2629_v31  ;;  %v2631_v5 = vpop.f32.mrb[11].mxu0  ;;  %v2799_v23 = vadd.f32 %v5364_v10, %v5362_v41 }
 0x581   : > { %vm2740_vm7 = vcmp.ge.f32.partialorder %v2631_v5, 0.0  ;;  %v2772_v16 = vmul.f32 %v5358_v2, %v2631_v5 }
 0x582   : > { %v5376_v36 = vsel %vm2739_vm5, %v2629_v31, %v2771_v20  ;;  %v2823_v9 = vadd.f32 %v2816_v18, %v2815_v50 }
 0x583   : > { %v5378_v51 = vsel %vm2740_vm7, %v2631_v5, %v2772_v16  ;;  %v2800_v53 = vadd.f32 %v2799_v23, %v5376_v36  ;;  %v2817_v57 = vmul.f32 %v5376_v36, %v5376_v36  ;;  %v2635_v4 = vpop.f32.mrb[12].mxu0 }
 0x584   : > { %v2818_v1 = vmul.f32 %v5378_v51, %v5378_v51  ;;  %vm2743_vm8 = vcmp.ge.f32.partialorder %v2635_v4, 0.0  ;;  %v2775_v25 = vmul.f32 %v5374_v3, %v2635_v4  ;;  %v2637_v63 = vpop.f32.mrb[13].mxu0 }
 0x585   : > { %v2801_v12 = vadd.f32 %v2800_v53, %v5378_v51  ;;  %v2824_v38 = vadd.f32 %v2823_v9, %v2817_v57  ;;  %vm2744_vm9 = vcmp.ge.f32.partialorder %v2637_v63, 0.0  ;;  %v2776_v30 = vmul.f32 %v5374_v3, %v2637_v63 }
 0x586   : > { %v5390_v54 = vsel %vm2743_vm8, %v2635_v4, %v2775_v25  ;;  %vm3287_vm8 = vcmp.lt.s32.totalorder %v310_v6, 512 }
 0x587   : > { %v2825_v32 = vadd.f32 %v2824_v38, %v2818_v1  ;;  %v5392_v19 = vsel %vm2744_vm9, %v2637_v63, %v2776_v30  ;;  %v2641_v35 = vpop.f32.mrb[14].mxu0  ;;  %v2802_v22 = vadd.f32 %v2801_v12, %v5390_v54  ;;  %v2819_v34 = vmul.f32 %v5390_v54, %v5390_v54 }
 0x588   : > { %v2820_v29 = vmul.f32 %v5392_v19, %v5392_v19  ;;  %vm2747_vm10 = vcmp.ge.f32.partialorder %v2641_v35, 0.0  ;;  %v2779_v62 = vmul.f32 %v5388_v49, %v2641_v35  ;;  %v2643_v43 = vpop.f32.mrb[15].mxu0 }
 0x589   : > { %vm2748_vm11 = vcmp.ge.f32.partialorder %v2643_v43, 0.0  ;;  %v2780_v8 = vmul.f32 %v5388_v49, %v2643_v43  ;;  %v2803_v24 = vadd.f32 %v2802_v22, %v5392_v19  ;;  %v2826_v60 = vadd.f32 %v2825_v32, %v2819_v34 }
 0x58a   : > { %v5402_v0 = vsel %vm2747_vm10, %v2641_v35, %v2779_v62 }
 0x58b   : > { %v5404_v50 = vsel %vm2748_vm11, %v2643_v43, %v2780_v8  ;;  %v2804_v31 = vadd.f32 %v2803_v24, %v5402_v0  ;;  %v2821_v18 = vmul.f32 %v5402_v0, %v5402_v0  ;;  %v2827_v20 = vadd.f32 %v2826_v60, %v2820_v29 }
 0x58c   : > { %v2822_v5 = vmul.f32 %v5404_v50, %v5404_v50 }
 0x58d   : > { %v2805_v23 = vadd.f32 %v2804_v31, %v5404_v50  ;;  %v2828_v16 = vadd.f32 %v2827_v20, %v2821_v18 }
 0x58f   : > { %2806 = vadd.xlane.f32.xlu1 %v2805_v23  ;;  %v2829_v9 = vadd.f32 %v2828_v16, %v2822_v5 }
 0x591   : > { %2830 = vadd.xlane.f32.xlu0 %v2829_v9 }
 0x606   : > { %v2712_v53 = vpop.f32.mrb[8].mxu1 }
 0x607   : > { %vm2737_vm12 = vcmp.ge.f32.partialorder %v2712_v53, 0.0  ;;  %v2769_v57 = vmul.f32 %v5356_v11, %v2712_v53  ;;  %v2714_v4 = vpop.f32.mrb[9].mxu1 }
 0x608   : > { %vm2738_vm13 = vcmp.ge.f32.partialorder %v2714_v4, 0.0  ;;  %v2770_v1 = vmul.f32 %v5356_v11, %v2714_v4 }
 0x609   : > { %v5414_v25 = vsel %vm2737_vm12, %v2712_v53, %v2769_v57 }
 0x60a   : > { %v2953_v63 = vmul.f32 %v5414_v25, %v5414_v25  ;;  %v5418_v12 = vsel %vm2738_vm13, %v2714_v4, %v2770_v1  ;;  %v2718_v38 = vpop.f32.mrb[10].mxu1 }
 0x60b   : > { %v2937_v30 = vadd.f32 %v5418_v12, %v5414_v25  ;;  %v2954_v32 = vmul.f32 %v5418_v12, %v5418_v12  ;;  %vm2741_vm0 = vcmp.ge.f32.partialorder %v2718_v38, 0.0  ;;  %v2773_v35 = vmul.f32 %v5358_v2, %v2718_v38  ;;  %v2720_v22 = vpop.f32.mrb[11].mxu1 }
 0x60c   : > { %vm2742_vm6 = vcmp.ge.f32.partialorder %v2720_v22, 0.0  ;;  %v2774_v11 = vmul.f32 %v5358_v2, %v2720_v22 }
 0x60d   : > { %v2961_v34 = vadd.f32 %v2954_v32, %v2953_v63  ;;  %v5426_v29 = vsel %vm2741_vm0, %v2718_v38, %v2773_v35 }
 0x60e   : > { %v2938_v62 = vadd.f32 %v2937_v30, %v5426_v29  ;;  %v2955_v43 = vmul.f32 %v5426_v29, %v5426_v29  ;;  %v5431_v8 = vsel %vm2742_vm6, %v2720_v22, %v2774_v11  ;;  %v2724_v24 = vpop.f32.mrb[12].mxu1 }
 0x60f   : > { %v2956_v60 = vmul.f32 %v5431_v8, %v5431_v8  ;;  %vm2745_vm1 = vcmp.ge.f32.partialorder %v2724_v24, 0.0  ;;  %v2777_v31 = vmul.f32 %v5374_v3, %v2724_v24  ;;  %v2726_v18 = vpop.f32.mrb[13].mxu1 }
 0x610   : > { %v2962_v20 = vadd.f32 %v2961_v34, %v2955_v43  ;;  %v2939_v2 = vadd.f32 %v2938_v62, %v5431_v8  ;;  %vm2746_vm14 = vcmp.ge.f32.partialorder %v2726_v18, 0.0  ;;  %v2778_v5 = vmul.f32 %v5374_v3, %v2726_v18 }
 0x611   : > { %v5438_v23 = vsel %vm2745_vm1, %v2724_v24, %v2777_v31 }
 0x612   : > { %v2963_v16 = vadd.f32 %v2962_v20, %v2956_v60  ;;  %v2940_v9 = vadd.f32 %v2939_v2, %v5438_v23  ;;  %v2957_v53 = vmul.f32 %v5438_v23, %v5438_v23  ;;  %v5443_v57 = vsel %vm2746_vm14, %v2726_v18, %v2778_v5  ;;  %v2730_v4 = vpop.f32.mrb[14].mxu1 }
 0x613   : > { %v2958_v1 = vmul.f32 %v5443_v57, %v5443_v57  ;;  %vm2749_vm2 = vcmp.ge.f32.partialorder %v2730_v4, 0.0  ;;  %v2781_v63 = vmul.f32 %v5388_v49, %v2730_v4  ;;  %v2732_v38 = vpop.f32.mrb[15].mxu1 }
 0x614   : > { %vm2750_vm3 = vcmp.ge.f32.partialorder %v2732_v38, 0.0  ;;  %v2782_v3 = vmul.f32 %v5388_v49, %v2732_v38  ;;  %v2941_v30 = vadd.f32 %v2940_v9, %v5443_v57  ;;  %v2964_v32 = vadd.f32 %v2963_v16, %v2957_v53 }
 0x615   : > { %v5450_v35 = vsel %vm2749_vm2, %v2730_v4, %v2781_v63 }
 0x616   : > { %v5452_v22 = vsel %vm2750_vm3, %v2732_v38, %v2782_v3  ;;  %v2942_v11 = vadd.f32 %v2941_v30, %v5450_v35  ;;  %v2959_v34 = vmul.f32 %v5450_v35, %v5450_v35  ;;  %v2965_v62 = vadd.f32 %v2964_v32, %v2958_v1 }
 0x617   : > { %v2960_v43 = vmul.f32 %v5452_v22, %v5452_v22 }
 0x618   : > { %v2943_v24 = vadd.f32 %v2942_v11, %v5452_v22  ;;  %v2966_v60 = vadd.f32 %v2965_v62, %v2959_v34 }
 0x61a   : > { %2944 = vadd.xlane.f32.xlu0 %v2943_v24  ;;  %v2967_v49 = vadd.f32 %v2966_v60, %v2960_v43 }
 0x61c   : > { %2968 = vadd.xlane.f32.xlu1 %v2967_v49  ;;  %v2807_v31 = vpop.xlane.xlu1 %2806 }
 0x61d   : > { %v2808_v18 = vrot.slane %v2807_v31, 4 }
 0x61e   : > { %v2831_v20 = vpop.xlane.xlu0 %2830 }
 0x61f   : > { %v2809_v2 = vadd.f32 %v2808_v18, %v2807_v31  ;;  %v2832_v5 = vrot.slane %v2831_v20, 4 }
 0x621   : > { %v2810_v16 = vrot.slane %v2809_v2, 2  ;;  %v2833_v9 = vadd.f32 %v2832_v5, %v2831_v20 }
 0x623   : > { %v2834_v53 = vrot.slane %v2833_v9, 2  ;;  %v2811_v4 = vadd.f32 %v2810_v16, %v2809_v2 }
 0x625   : > { %v2812_v63 = vrot.slane %v2811_v4, 1  ;;  %v2835_v1 = vadd.f32 %v2834_v53, %v2833_v9 }
 0x627   : > { %v2813_v38 = vadd.f32 %v2812_v63, %v2811_v4  ;;  %v2836_v3 = vrot.slane %v2835_v1, 1 }
 0x629   : > { %3577 = vpush %v2813_v38  ;;  %v2837_v30 = vadd.f32 %v2836_v3, %v2835_v1 }
 0x62b   : > { %3579 = vpush %v2837_v30 }
 0x65a   : > { %s3578_s12 = spop %3577 }
 0x65b   : > { %s2841_s18 = smul.f32 0.00012207031, %s3578_s12 }
 0x65c   : > { %s3580_s27 = spop %3579 }
 0x65d   : > { %s2845_s20 = smul.f32 %s2841_s18, %s2841_s18  ;;  %v2856_v24 = vstv %s2841_s18 }
 0x65e   : > { %s2844_s17 = smul.f32 0.00012207031, %s3580_s27 }
 0x660   : > { %s2846_s14 = ssub.f32 %s2844_s17, %s2845_s20  ;;  %s280_s17 = scalar_lea.vmem [#allocation7], %s3393_s10 }
 0x661   : > { %s3872_s10 = smov [#allocation7]  }
 0x662   : > { %s2847_s11 = sadd.f32 1e-05, %s2846_s14  ;;  %s3305_s14 = sshll.u32 %s280_s17, 4  ;;  %s5537_s14 = int_to_ptr.vmem [resolvable:$true] %s3305_s14 }
 0x664   : > { %v2848_v32 = vstv %s2847_s11 }
 0x665   : > { %3716 = vrsqrt.f32 %v2848_v32 }
 0x66f   : > { %v3717_v11 = vpop.eup %3716 }
 0x670   : > { %3581 = vpush %v3717_v11 }
 0x6a1   : > { %s3582_s30 = spop %3581 }
 0x6a2   : > { %v2851_v34 = vstv %s3582_s30 }
 0x6a3   : > { %v2852_v62 = vmul.f32 %v5191_v37, %v2851_v34  ;;  %v2853_v43 = vmul.f32 %v5197_v42, %v2851_v34  ;;  %v5463_v60 = vmul.f32 %v5206_v56, %v2851_v34  ;;  %v2855_v49 = vmul.f32 %v5216_v48, %v2851_v34 }
 0x6a5   : > { %v2858_v31 = vmul.f32 %v2856_v24, %v2853_v43  ;;  %v2857_v18 = vmul.f32 %v2856_v24, %v2852_v62  ;;  %v2859_v16 = vmul.f32 %v2856_v24, %v5463_v60  ;;  %v2860_v9 = vmul.f32 %v2856_v24, %v2855_v49 }
 0x6a7   : > { %v2945_v20 = vpop.xlane.xlu0 %2944  ;;  %2867 = vrot.lane.b32.xlu1 %v2858_v31, %s3865_s19  ;;  %2865 = vrot.lane.b32.xlu0 %v2857_v18, %s3865_s19  ;;  %v3868_v18 = vmov 4  }
 0x6a8   : > { %v2946_v2 = vrot.slane %v2945_v20, 4  ;;  %3674 = vset.pattern.permute.xlu1 %v3868_v18  ;;  %3675 = vset.pattern.permute.xlu0 %v3868_v18 }
 0x6a9   : > { %v2969_v5 = vpop.xlane.xlu1 %2968 }
 0x6aa   : > { %v2947_v53 = vadd.f32 %v2946_v2, %v2945_v20  ;;  %v2970_v4 = vrot.slane %v2969_v5, 4 }
 0x6ab   : > { %2869 = vrot.lane.b32.xlu1 %v2859_v16, %s3865_s19  ;;  %2871 = vrot.lane.b32.xlu0 %v2860_v9, %s3865_s19 }
 0x6ac   : > { %v2948_v63 = vrot.slane %v2947_v53, 2  ;;  %v2971_v1 = vadd.f32 %v2970_v4, %v2969_v5 }
 0x6ae   : > { %v2972_v38 = vrot.slane %v2971_v1, 2  ;;  %v2949_v3 = vadd.f32 %v2948_v63, %v2947_v53 }
 0x6b0   : > { %v2950_v30 = vrot.slane %v2949_v3, 1  ;;  %v2973_v32 = vadd.f32 %v2972_v38, %v2971_v1 }
 0x6b2   : > { %v2951_v11 = vadd.f32 %v2950_v30, %v2949_v3  ;;  %v2974_v34 = vrot.slane %v2973_v32, 1 }
 0x6b4   : > { %3583 = vpush %v2951_v11  ;;  %v2975_v31 = vadd.f32 %v2974_v34, %v2973_v32 }
 0x6b6   : > { %3585 = vpush %v2975_v31  ;;  %v3869_v31 = vmov 5  }
 0x6e5   : > { %s3584_s15 = spop %3583 }
 0x6e6   : > { %s2979_s16 = smul.f32 0.00012207031, %s3584_s15 }
 0x6e7   : > { %s3586_s29 = spop %3585 }
 0x6e8   : > { %s2983_s7 = smul.f32 %s2979_s16, %s2979_s16  ;;  %v2994_v9 = vstv %s2979_s16  ;;  %s3291_s16 = scalar_lea.sflag [#allocation4], %s4049_s26 }
 0x6e9   : > { %s2982_s12 = smul.f32 0.00012207031, %s3586_s29  ;;  %s3786_s29 = sshll.u32 %s3872_s10, 4  ;;  %s3787_s29 = int_to_ptr.vmem [resolvable:$false] %s3786_s29 }
 0x6ea   : > { %p3789_p13 = scmp.lt.s32.totalorder %s5537_s14, %s3787_s29 }
 0x6eb   : > { %s2984_s18 = ssub.f32 %s2982_s12, %s2983_s7  ;;  %s3788_s7 = scalar_lea.vmem %s3787_s29, 128 }
 0x6ed   : > { %s2985_s27 = sadd.f32 1e-05, %s2984_s18 }
 0x6ef   : > { %v2986_v24 = vstv %s2985_s27 }
 0x6f0   : > { %3718 = vrsqrt.f32 %v2986_v24 }
 0x6fa   : > { %v3719_v20 = vpop.eup %3718 }
 0x6fb   : > { %3587 = vpush %v3719_v20 }
 0x719   : > { %v2868_v30 = vpop.permute.xlu1 %2867  ;;  %v2866_v32 = vpop.permute.xlu0 %2865 }
 0x71a   : > { %v2877_v11 = vsub.f32 %v5191_v37, %v2866_v32 }
 0x71d   : > { %v2870_v34 = vpop.permute.xlu1 %2869 }
 0x71e   : > { %v2879_v18 = vsub.f32 %v5206_v56, %v2870_v34 }
 0x72c   : > { %s3588_s20 = spop %3587 }
 0x72d   : > { %v2989_v2 = vstv %s3588_s20 }
 0x72e   : > { %v2990_v5 = vmul.f32 %v5191_v37, %v2989_v2  ;;  %v2991_v16 = vmul.f32 %v5197_v42, %v2989_v2  ;;  %v2992_v53 = vmul.f32 %v5206_v56, %v2989_v2  ;;  %v2993_v4 = vmul.f32 %v5216_v48, %v2989_v2 }
 0x730   : > { %v2996_v63 = vmul.f32 %v2994_v9, %v2991_v16  ;;  %v2995_v1 = vmul.f32 %v2994_v9, %v2990_v5  ;;  %v2998_v38 = vmul.f32 %v2994_v9, %v2993_v4  ;;  %v2997_v3 = vmul.f32 %v2994_v9, %v2992_v53 }
 0x732   : > { %3005 = vrot.lane.b32.xlu0 %v2996_v63, %s3865_s19  ;;  %3003 = vrot.lane.b32.xlu1 %v2995_v1, %s3865_s19 }
 0x736   : > { %3009 = vrot.lane.b32.xlu0 %v2998_v38, %s3865_s19  ;;  %3007 = vrot.lane.b32.xlu1 %v2997_v3, %s3865_s19  ;;  %s3484_s19 = sshll.u32 %s3929_s25, 6  ;;  %s3782_s25 = scalar_lea.vmem %s5537_s14, 64 }
 0x737   : > { %s5535_s15 = scalar_lea.hbm %s5585_s6, %s3484_s19  ;;  %p3783_p6 = scmp.ne.s32.totalorder %s5537_s14, %s3782_s25 }
 0x738   : > { %p3790_p0 = scmp.lt.s32.totalorder %s3788_s7, %s3782_s25 }
 0x739   : > { %p3784_p9 = pnand %p3783_p6, %p4000_p8 }
 0x73a   : > { %2888 = vperm.xlu0 %3675, %v2853_v43   ;;  %2883 = vperm.xlu1 %3674, %v2852_v62   ;;  %v2878_v62 = vsub.f32 %v5197_v42, %v2868_v30  ;;  %v2872_v43 = vpop.permute.xlu0 %2871  ;;  %p3791_p5 = por %p3790_p0, %p3789_p13 }
 0x73b   : > { %p3785_p12 = pneg %p3784_p9 }
 0x73d   : > { %p3792_p10 = pnand %p3791_p5, %p3785_p12 }
 0x73e   : > { %2898 = vperm.xlu0 %3675, %v2855_v49   ;;  %3021 = vperm.xlu1 %3674, %v2990_v5   ;;  %v2880_v49 = vsub.f32 %v5216_v48, %v2872_v43 }
 0x742   : > { %3676 = vset.pattern.permute.xlu0 %v3869_v31  ;;  %3026 = vperm.xlu1 %3674, %v2991_v16  }
 0x743   : > { %2911 = vperm.xlu0 %3676, %v2877_v11  }
 0x746   : > { %2893 = vperm.xlu1 %3674, %v5463_v60  }
 0x747   : > { %2921 = vperm.xlu0 %3676, %v2879_v18  }
 0x74a   : > { %3031 = vperm.xlu1 %3674, %v2992_v53  }
 0x74e   : > { %3036 = vperm.xlu1 %3674, %v2993_v4   ;;  %v3870_v4 = vmov 6  }
 0x752   : > { %3677 = vset.pattern.permute.xlu1 %v3869_v31 }
 0x753   : > { %2916 = vperm.xlu1 %3677, %v2878_v62  }
 0x757   : > { %2926 = vperm.xlu1 %3677, %v2880_v49  }
 0x7a4   : > { %v3006_v24 = vpop.permute.xlu0 %3005  ;;  %v3004_v20 = vpop.permute.xlu1 %3003 }
 0x7a5   : > { %v3016_v2 = vsub.f32 %v5197_v42, %v3006_v24  ;;  %v3015_v5 = vsub.f32 %v5191_v37, %v3004_v20 }
 0x7a7   : > { %3054 = vperm.xlu0 %3676, %v3016_v2   ;;  %3049 = vperm.xlu1 %3677, %v3015_v5  }
 0x7a8   : > { %v3010_v60 = vpop.permute.xlu0 %3009  ;;  %v3008_v16 = vpop.permute.xlu1 %3007 }
 0x7a9   : > { %v3018_v9 = vsub.f32 %v5216_v48, %v3010_v60  ;;  %v3017_v53 = vsub.f32 %v5206_v56, %v3008_v16 }
 0x7ab   : > { %3064 = vperm.xlu0 %3676, %v3018_v9   ;;  %3059 = vperm.xlu1 %3677, %v3017_v53  }
 0x7af   : > { %3678 = vset.pattern.permute.xlu1 %v3870_v4  ;;  %3679 = vset.pattern.permute.xlu0 %v3870_v4 }
 0x7b0   : > { %3241 = vperm.xlu1 %3678, %v5191_v37  }
 0x7b9   : > { %v2884_v63 = vpop.permute.xlu1 %2883  ;;  %v2889_v42 = vpop.permute.xlu0 %2888 }
 0x7ba   : > { %v2901_v48 = vmul.f32 %v2884_v63, %v5362_v41  ;;  %v2902_v56 = vmul.f32 %v2884_v63, %v5364_v10  ;;  %v2903_v62 = vmul.f32 %v2889_v42, %v5376_v36  ;;  %v2904_v43 = vmul.f32 %v2889_v42, %v5378_v51 }
 0x7bd   : > { %v3022_v1 = vpop.permute.xlu1 %3021  ;;  %v2899_v30 = vpop.permute.xlu0 %2898 }
 0x7be   : > { %v2907_v60 = vmul.f32 %v2899_v30, %v5402_v0  ;;  %v2908_v41 = vmul.f32 %v2899_v30, %v5404_v50 }
 0x7c1   : > { %v3027_v38 = vpop.permute.xlu1 %3026 }
 0x7c2   : > { %v2912_v11 = vpop.permute.xlu0 %2911 }
 0x7c3   : > { %v2929_v31 = vadd.f32 %v2912_v11, %v2901_v48  ;;  %v2930_v18 = vadd.f32 %v2912_v11, %v2902_v56  ;;  %v3040_v11 = vmul.f32 %v3022_v1, %v5418_v12 }
 0x7c5   : > { %v2894_v3 = vpop.permute.xlu1 %2893  ;;  %v3075_v10 = vadd.f32 %v2929_v31, %v5240_v40  ;;  %v3076_v16 = vadd.f32 %v2930_v18, %v5242_v55 }
 0x7c6   : > { %v2905_v37 = vmul.f32 %v2894_v3, %v5390_v54  ;;  %v2906_v49 = vmul.f32 %v2894_v3, %v5392_v19  ;;  %v2922_v24 = vpop.permute.xlu0 %2921 }
 0x7c8   : > { %v2933_v9 = vadd.f32 %v2922_v24, %v2905_v37  ;;  %v2934_v36 = vadd.f32 %v2922_v24, %v2906_v49 }
 0x7c9   : > { %v3032_v32 = vpop.permute.xlu1 %3031 }
 0x7ca   : > { %v3083_v3 = vadd.f32 %v2933_v9, %v5260_v44  ;;  %v3084_v0 = vadd.f32 %v2934_v36, %v5262_v52  ;;  %v3041_v44 = vmul.f32 %v3027_v38, %v5426_v29  ;;  %v3042_v52 = vmul.f32 %v3027_v38, %v5431_v8 }
 0x7cb   : > { %v3871_v9 = vmov 1966171168  }
 0x7cc   : > { %v3263_v36 = vunpack.c.l.s4 %v3871_v9 }
 0x7cd   : > { %v3037_v34 = vpop.permute.xlu1 %3036 }
 0x7ce   : > { %v3046_v37 = vmul.f32 %v3037_v34, %v5452_v22 }
 0x7d2   : > { %v2917_v20 = vpop.permute.xlu1 %2916 }
 0x7d3   : > { %v2931_v2 = vadd.f32 %v2917_v20, %v2903_v62  ;;  %v2932_v5 = vadd.f32 %v2917_v20, %v2904_v43  ;;  %v3043_v62 = vmul.f32 %v3032_v32, %v5438_v23  ;;  %v3045_v43 = vmul.f32 %v3037_v34, %v5450_v35 }
 0x7d5   : > { %v3079_v51 = vadd.f32 %v2931_v2, %v5244_v39  ;;  %v3080_v54 = vadd.f32 %v2932_v5, %v5246_v47  ;;  %v294_v39 = vld [vmem:[#allocation5] sm:$0x1]  ;;  %v3039_v47 = vmul.f32 %v3022_v1, %v5414_v25  ;;  %v3044_v1 = vmul.f32 %v3032_v32, %v5443_v57 }
 0x7d6   : > { %v2927_v53 = vpop.permute.xlu1 %2926 }
 0x7d7   : > { %v3519_v19 = vpack.c.bf16 %v3079_v51, %v3075_v10  ;;  %v2935_v4 = vadd.f32 %v2927_v53, %v2907_v60  ;;  %v2936_v63 = vadd.f32 %v2927_v53, %v2908_v41  ;;  %v3517_v42 = vpack.c.bf16 %v3080_v54, %v3076_v16 }
 0x7d8   : > { %v3264_v53 = vunpack.c.0.s8 %v3263_v36 }
 0x7d9   : > { %v3087_v50 = vadd.f32 %v2935_v4, %v5264_v21  ;;  %v3088_v40 = vadd.f32 %v2936_v63, %v5266_v46  ;;  %3518 = vmatprep.subr.bf16.mxu0 %v3517_v42 }
 0x7da   : > { %3520 = vmatpush1.bf16.msra.mxu0 %v3519_v19 }
 0x7db   : > { %v3523_v55 = vpack.c.bf16 %v3087_v50, %v3083_v3  ;;  %v3521_v30 = vpack.c.bf16 %v3088_v40, %v3084_v0 }
 0x7dd   : > { %3522 = vmatprep.subr.bf16.mxu0 %v3521_v30 }
 0x7de   : > { %3524 = vmatpush1.bf16.msra.mxu0 %v3523_v55 }
 0x7e1   : > { %3476 = vmatmul.mubr.msk.f32.vlgmr.msra.gmra.mrb[16].mxu0 %vm1994_vm15, %v294_v39 }
 0x826   : > { %v3055_v21 = vpop.permute.xlu0 %3054  ;;  %v3050_v48 = vpop.permute.xlu1 %3049 }
 0x827   : > { %v3069_v46 = vadd.f32 %v3055_v21, %v3041_v44  ;;  %v3070_v56 = vadd.f32 %v3055_v21, %v3042_v52  ;;  %v3067_v31 = vadd.f32 %v3050_v48, %v3039_v47  ;;  %v3068_v18 = vadd.f32 %v3050_v48, %v3040_v11 }
 0x829   : > { %v3081_v25 = vadd.f32 %v3069_v46, %v5315_v61  ;;  %v3082_v12 = vadd.f32 %v3070_v56, %v5317_v26  ;;  %v3077_v29 = vadd.f32 %v3067_v31, %v5311_v28  ;;  %v3078_v8 = vadd.f32 %v3068_v18, %v5313_v45 }
 0x82a   : > { %v3065_v38 = vpop.permute.xlu0 %3064  ;;  %v3060_v49 = vpop.permute.xlu1 %3059 }
 0x82b   : > { %v3527_v24 = vpack.c.bf16 %v3081_v25, %v3077_v29  ;;  %v3073_v20 = vadd.f32 %v3065_v38, %v3045_v43  ;;  %v3074_v2 = vadd.f32 %v3065_v38, %v3046_v37  ;;  %v3071_v23 = vadd.f32 %v3060_v49, %v3043_v62 }
 0x82c   : > { %v3072_v5 = vadd.f32 %v3060_v49, %v3044_v1  ;;  %v3525_v35 = vpack.c.bf16 %v3082_v12, %v3078_v8 }
 0x82d   : > { %v3089_v22 = vadd.f32 %v3073_v20, %v5331_v33  ;;  %v3090_v61 = vadd.f32 %v3074_v2, %v5333_v27  ;;  %v3085_v26 = vadd.f32 %v3071_v23, %v5335_v58 }
 0x82e   : > { %v3086_v28 = vadd.f32 %v3072_v5, %v5337_v59  ;;  %3526 = vmatprep.subr.bf16.mxu1 %v3525_v35 }
 0x82f   : > { %v3531_v45 = vpack.c.bf16 %v3089_v22, %v3085_v26  ;;  %3528 = vmatpush1.bf16.msra.mxu1 %v3527_v24  ;;  %v3242_v32 = vpop.permute.xlu1 %3241 }
 0x830   : > { %v3529_v57 = vpack.c.bf16 %v3090_v61, %v3086_v28 }
 0x832   : > { %3530 = vmatprep.subr.bf16.mxu1 %v3529_v57 }
 0x833   : > { %3532 = vmatpush1.bf16.msra.mxu1 %v3531_v45 }
 0x836   : > { %3477 = vmatmul.mubr.msk.f32.vlgmr.msra.gmra.mrb[16].mxu1 %vm1994_vm15, %v294_v39 }
 0x8b4   : > { %v3160_v34 = vpop.f32.mrb[16].mxu0 }
 0x8b5   : > { %vm3236_vm4 = vcmp.ge.f32.partialorder %v3160_v34, 0.0  ;;  %v3162_v60 = vpop.f32.mrb[17].mxu0  ;;  %v3244_v41 = vmul.f32 %v3242_v32, %v3160_v34 }
 0x8b6   : > { %vm3237_vm5 = vcmp.ge.f32.partialorder %v3162_v60, 0.0  ;;  %v3245_v33 = vmul.f32 %v3242_v32, %v3162_v60 }
 0x8b7   : > { %v3248_v27 = vsel %vm3236_vm4, %v3160_v34, %v3244_v41 }
 0x8b8   : > { %v3249_v10 = vsel %vm3237_vm5, %v3162_v60, %v3245_v33  ;;  %v3252_v58 = vadd.f32 %v3248_v27, %v4083_v15  ;;  %v3267_v15 = vsub.s32 %v3264_v53, %v4073_v7 }
 0x8b9   : > { %v3253_v59 = vadd.f32 %v3249_v10, %v4079_v13 }
 0x8bb   : > { %v3260_v16 = vcombine.low %v3252_v58, %v3253_v59 }
 0x8bd   : > { %v3268_v50 = vrot.slane %v3260_v16, %v3267_v15 }
 0x909   : > { %v3231_v51 = vpop.f32.mrb[16].mxu1 }
 0x90a   : > { %vm3238_vm15 = vcmp.ge.f32.partialorder %v3231_v51, 0.0  ;;  %v3233_v54 = vpop.f32.mrb[17].mxu1  ;;  %v3246_v19 = vmul.f32 %v3242_v32, %v3231_v51 }
 0x90b   : > { %vm3239_vm7 = vcmp.ge.f32.partialorder %v3233_v54, 0.0  ;;  %v3247_v4 = vmul.f32 %v3242_v32, %v3233_v54 }
 0x90c   : > { %v3250_v63 = vsel %vm3238_vm15, %v3231_v51, %v3246_v19 }
 0x90d   : > { %v3251_v42 = vsel %vm3239_vm7, %v3233_v54, %v3247_v4  ;;  %v3254_v3 = vadd.f32 %v3250_v63, %v4085_v17 }
 0x90e   : > { %v3255_v13 = vadd.f32 %v3251_v42, %v4081_v14 }
 0x910   : > { %v3261_v0 = vcombine.low %v3254_v3, %v3255_v13 }
 0x912   : > { %v3275_v40 = vrot.slane %v3261_v0, %v3267_v15 }
 0x914   : > { %v3276_v55 = vcombine.low %v3268_v50, %v3275_v40 }
 0x916   : > { %v3283_v30 = vrot.slane %v3276_v55, %v3267_v15 }
 0x918   : > { %3289 = vst.msk [vmem:[%s280_s17] sm:$0xf] %vm3287_vm8, %v3283_v30 }
 0x919   : > { %3795 = shalt.err (!%p3792_p10)
}
 0x91a   : > { %s3796_s26 = scalar_lea.hbm %s5535_s15, 64  ;;  %s3800_s27 = scalar_lea.hbm %s5585_s6, 128 }
 0x91b   : > { %p3797_p1 = scmp.ne.s32.totalorder %s5535_s15, %s3796_s26  ;;  %p3801_p3 = scmp.lt.u32.totalorder %s5535_s15, %s5585_s6 }
 0x91c   : > { %p3802_p11 = scmp.lt.u32.totalorder %s3800_s27, %s3796_s26  ;;  %p3804_p6 = scmp.lt.u32.totalorder %s3796_s26, %s5535_s15 }
 0x91d   : > { %p3798_p2 = pnand %p3797_p1, %p4000_p8 }
 0x91e   : > { %p3803_p4 = por %p3802_p11, %p3801_p3 }
 0x91f   : > { %p3799_p7 = pneg %p3798_p2 }
 0x920   : > { %p3805_p9 = por %p3804_p6, %p3803_p4 }
 0x922   : > { %p3806_p12 = pnand %p3805_p9, %p3799_p7 }
 0x924   : > { %3809 = shalt.err (!%p3806_p12)
}
 0x925   : > { %3595 = dma.vmem_to_hbm [thread:$0]  (%p4000_p8), %s5537_s14, 64, %s5535_s15, %s3291_s16  }
 0x926 PF: > { %s3317_s17 = sand.u32 1, %s3840_s21   ;;  %p5616_p13 = scmp.ne.s32.totalorder %s5590_s28, 0 }
 0x927   : > { %p5617_p0 = scmp.ge.s32.totalorder %s3852_s24, 2  ;;  %s3318_s11 = scalar_lea.sflag [#allocation4], %s3317_s17 }
 0x929   : > { %p3606_p5 = pnand %p5617_p0, %p5616_p13 }
 0x92b   : > { %3835 = dma.done.wait (!%p3606_p5), %s3318_s11, 64  }
 0x92c   : > { %3837 = vsyncadd (!%p3606_p5), %s3318_s11, 4294967232  ;;  %p20_p10 = scmp.ge.s32.totalorder %s3956_s8, 4   ;;  %s5618_s21 = smov %s3844_s22 }
 0x92d   : > { %s5619_s22 = smov %s3848_s23  ;;  %s5620_s23 = smov %s3992_s13 }
 0x92e   : > { %s5621_s24 = smov %s3956_s8  ;;  %22 = sbr.rel (!%p20_p10) target bundleno = 6 (0x6), region = 93 }
 0x935   :  { %3323 = vsyncpa [#allocation3], 1 }
 0x936   :  { %3325 = vsyncpa [#allocation3 + $0x1], 1 }
 0x937   :  { %3326 = vsyncpa [#allocation6], 1 }
 0x938   :  { %3327 = vsyncpa [#allocation4], 1 }
 0x939   :  { %3329 = vsyncpa [#allocation4 + $0x1], 1 }

</bundles_post_ra>
